<compile_context>
chip_gen: v6e
topology: v6e:2x2x1
jax: 0.10.0
libtpu: 0.0.40
codegen_flags: <defaults>
</compile_context>

<pallas_src>
import functools

import jax
import jax.numpy as jnp
from jax.experimental import pallas as pl
from jax.experimental.pallas import tpu as pltpu


def _round_up(v, m):
    return (v + m - 1) // m * m


def _convlstm_kernel(w_ref, xh_ref, c_ref, h_out_ref, c_out_ref, patch_ref,
                     *, HID, CIN_PAD, KH, KW, Wp, MTp):
    # w_ref     : (4*HID, K+1)          bf16  [conv weight | bias col], g-gate x2
    # xh_ref    : (1, CIN_PAD, (RB+KH)*Wp) bf16  halo'd channel-major strip
    # c_ref     : (1, HID, MTp)         f32   current cell state strip
    # h_out_ref : (1, HID, MTp)         f32
    # c_out_ref : (1, HID, MTp)         f32
    # patch_ref : (K+1, MTp)            bf16  VMEM scratch: im2col + ones row
    K = KH * KW * CIN_PAD

    # Build the im2col block in VMEM: KH*KW static lane-offset slices of the
    # halo'd strip.  W/H zero-padding is already in the data -> no masks/rolls.
    for kh in range(KH):
        for kw in range(KW):
            t = kh * KW + kw
            start = kh * Wp + kw
            patch_ref[t * CIN_PAD:(t + 1) * CIN_PAD, :] = (
                xh_ref[0, :, start:start + MTp])
    # All-ones row -> bias folded into the matmul.
    patch_ref[K:K + 1, :] = jnp.ones((1, MTp), dtype=patch_ref.dtype)

    # Single MXU matmul per strip (bf16 operands, f32 accumulation).
    acc = jnp.dot(w_ref[...], patch_ref[...],
                  preferred_element_type=jnp.float32)          # (4*HID, MTp)

    # Per-gate activations (never materialize a full-width sigmoid result).
    i = jax.nn.sigmoid(acc[0 * HID:1 * HID, :])
    f = jax.nn.sigmoid(acc[1 * HID:2 * HID, :])
    o = jax.nn.sigmoid(acc[2 * HID:3 * HID, :])
    g = 2.0 * jax.nn.sigmoid(acc[3 * HID:4 * HID, :]) - 1.0    # == tanh(cc_g)

    c_next = f * c_ref[0] + i * g                              # f32 VPU
    h_next = o * jnp.tanh(c_next)

    h_out_ref[0] = h_next.astype(h_out_ref.dtype)              # lane-dense stores
    c_out_ref[0] = c_next.astype(c_out_ref.dtype)


def _pick_rows_per_strip(H, Wp, B, lane_cap=2048):
    """Whole-row strips, lanes <= lane_cap when possible, preferring an even
    total strip count so both v7x TensorCores stay busy."""
    divs = [d for d in range(H, 0, -1) if H % d == 0]
    fitting = [d for d in divs if d * Wp <= lane_cap] or [1]
    rb = fitting[0]
    if (B * (H // rb)) % 2 == 1:
        for d in fitting:
            if (B * (H // d)) % 2 == 0:
                rb = d
                break
    return rb


def conv_lstm_cell(x, h_cur, c_cur, weight, bias, kernel_size=(3, 3)):
    """ConvLSTM cell forward.

    x      : (B, H, W, Cin)            float32, NHWC
    h_cur  : (B, H, W, HID)            float32
    c_cur  : (B, H, W, HID)            float32
    weight : (KH, KW, Cin+HID, 4*HID)  gate order [i | f | o | g]
    bias   : (4*HID,)
    returns (h_next, c_next), each (B, H, W, HID) float32
    """
    B, H, W, Cin = x.shape
    HID = h_cur.shape[-1]
    KH, KW = kernel_size
    assert KH % 2 == 1 and KW % 2 == 1, "odd kernel sizes only"
    pH, pW = KH // 2, KW // 2
    CIN_TOT = Cin + HID
    COUT = 4 * HID
    CIN_PAD = _round_up(CIN_TOT, 16)   # bf16 sublane-pack aligned tap blocks
    K = KH * KW * CIN_PAD
    K_TOT = K + 1                      # + folded bias row
    Wp = W + 2 * pW                    # zero-padded width (junk cols in output)

    RB = _pick_rows_per_strip(H, Wp, B)   # image rows per strip
    S = H // RB                           # strips per image
    MTp = RB * Wp                         # lanes per strip (incl. junk cols)
    LH = (RB + KH) * Wp                   # halo'd strip lanes (extra zero row
                                          # keeps all static tap slices in-bounds)

    # --------- wrapper layout plumbing (all on 1x-sized tensors) ------------
    # Channel-major, zero-padded combined input; transpose ONCE, cast bf16 once.
    combined = jnp.concatenate([x, h_cur], axis=-1)               # (B,H,W,CT)
    combined = jnp.transpose(combined, (0, 3, 1, 2))              # (B,CT,H,W)
    combined = jnp.pad(
        combined,
        ((0, 0), (0, CIN_PAD - CIN_TOT), (pH, KH - pH), (pW, pW)),
    ).astype(jnp.bfloat16)                                        # (B,CP,H+KH,Wp)
    flat = combined.reshape(B, CIN_PAD, (H + KH) * Wp)

    # Overlapping halo'd row strips (overlap factor (RB+KH)/RB, vs 9x before).
    strips = jnp.stack(
        [flat[:, :, s * RB * Wp: s * RB * Wp + LH] for s in range(S)], axis=1
    ).reshape(B * S, CIN_PAD, LH)

    # Cell state in the same strip/lane layout (row stride Wp, junk cols = 0).
    cT = jnp.transpose(c_cur, (0, 3, 1, 2))                       # (B,HID,H,W)
    cT = jnp.pad(cT, ((0, 0), (0, 0), (0, 0), (0, 2 * pW)))       # (B,HID,H,Wp)
    cT = cT.reshape(B, HID, S, MTp)
    cT = jnp.transpose(cT, (0, 2, 1, 3)).reshape(B * S, HID, MTp)

    # Weight: pad channels, fold tanh (x2 on g-gate) and the bias column.
    w = jnp.pad(weight, ((0, 0), (0, 0), (0, CIN_PAD - CIN_TOT), (0, 0)))
    gate_scale = jnp.concatenate(
        [jnp.ones((3 * HID,), jnp.float32), jnp.full((HID,), 2.0, jnp.float32)])
    wmat = w.reshape(K, COUT) * gate_scale[None, :]               # (K, COUT)
    wT = jnp.concatenate([wmat.T, (bias * gate_scale)[:, None]],
                         axis=1).astype(jnp.bfloat16)             # (COUT, K+1)

    kernel = functools.partial(_convlstm_kernel, HID=HID, CIN_PAD=CIN_PAD,
                               KH=KH, KW=KW, Wp=Wp, MTp=MTp)

    out_shape = (jax.ShapeDtypeStruct((B * S, HID, MTp), jnp.float32),
                 jax.ShapeDtypeStruct((B * S, HID, MTp), jnp.float32))

    hT, cnT = pl.pallas_call(
        kernel,
        out_shape=out_shape,
        grid_spec=pltpu.PrefetchScalarGridSpec(
            num_scalar_prefetch=0,
            grid=(B * S,),
            in_specs=[
                # Resident weight+bias (~110 KB bf16 at HID=32).  For large HID
                # on v7x: pipeline_mode=pl.Buffered(1) and/or COUT-tile at 256.
                pl.BlockSpec((COUT, K_TOT), lambda m: (0, 0)),
                pl.BlockSpec((1, CIN_PAD, LH), lambda m: (m, 0, 0)),
                pl.BlockSpec((1, HID, MTp), lambda m: (m, 0, 0)),
            ],
            out_specs=[
                pl.BlockSpec((1, HID, MTp), lambda m: (m, 0, 0)),
                pl.BlockSpec((1, HID, MTp), lambda m: (m, 0, 0)),
            ],
            scratch_shapes=[pltpu.VMEM((K_TOT, MTp), jnp.bfloat16)],
        ),
        compiler_params=pltpu.CompilerParams(
            dimension_semantics=("parallel",),
            vmem_limit_bytes=48 * 1024 * 1024),   # within v7x's 64 MiB budget
    )(wT, strips, cT)

    # Drop the 2*pW junk columns per row and restore NHWC.
    def _unstrip(t):
        t = t.reshape(B, S, HID, RB, Wp)
        t = jnp.transpose(t, (0, 1, 3, 4, 2))[:, :, :, :W, :]
        return t.reshape(B, H, W, HID)

    return _unstrip(hT), _unstrip(cnT)


def _reference(x, h_cur, c_cur, weight, bias):
    """Pure-JAX f32 reference (NHWC conv via lax.conv_general_dilated)."""
    combined = jnp.concatenate([x, h_cur], axis=-1)
    out = jax.lax.conv_general_dilated(
        combined, weight, window_strides=(1, 1), padding="SAME",
        dimension_numbers=("NHWC", "HWIO", "NHWC"))
    out = out + bias
    cc_i, cc_f, cc_o, cc_g = jnp.split(out, 4, axis=-1)
    i = jax.nn.sigmoid(cc_i)
    f = jax.nn.sigmoid(cc_f)
    o = jax.nn.sigmoid(cc_o)
    g = jnp.tanh(cc_g)
    c_next = f * c_cur + i * g
    h_next = o * jnp.tanh(c_next)
    return h_next, c_next


if __name__ == "__main__":
    B, Cin, HID, H, W = 2, 4, 32, 16, 16
    KH, KW = 3, 3
    CIN_TOT = Cin + HID
    COUT = 4 * HID

    key = jax.random.PRNGKey(0)
    kx, kh, kc, kw_, kb = jax.random.split(key, 5)

    x = jax.random.normal(kx, (B, H, W, Cin), jnp.float32)
    h_cur = jax.random.normal(kh, (B, H, W, HID), jnp.float32)
    c_cur = jax.random.normal(kc, (B, H, W, HID), jnp.float32)

    # Parameter init matching nn.Conv2d(Cin+HID, 4*HID, 3, padding=1).
    fan_in = CIN_TOT * KH * KW
    bound = 1.0 / jnp.sqrt(fan_in)
    weight = jax.random.uniform(kw_, (KH, KW, CIN_TOT, COUT), jnp.float32,
                                -bound, bound)
    bias = jax.random.uniform(kb, (COUT,), jnp.float32, -bound, bound)

    h_next, c_next = conv_lstm_cell(x, h_cur, c_cur, weight, bias, (KH, KW))
    jax.block_until_ready((h_next, c_next))

    h_ref, c_ref = _reference(x, h_cur, c_cur, weight, bias)
    # Tolerance relaxed vs f32 reference: conv matmul uses bf16 operands
    # (f32 accumulation) -- deliberate precision/speed tradeoff.
    assert float(jnp.max(jnp.abs(h_next - h_ref))) < 3e-2
    assert float(jnp.max(jnp.abs(c_next - c_ref))) < 3e-2

    print("KERNEL_OK")
</pallas_src>

<mosaic_0001>
module attributes {stable_mosaic.version = 11 : i64} {
  func.func @_convlstm_kernel(%arg0: i32, %arg1: memref<128x433xbf16, #tpu.memory_space<vmem>>, %arg2: memref<1x48x342xbf16, #tpu.memory_space<vmem>>, %arg3: memref<1x32x288xf32, #tpu.memory_space<vmem>>, %arg4: memref<1x32x288xf32, #tpu.memory_space<vmem>>, %arg5: memref<1x32x288xf32, #tpu.memory_space<vmem>>, %arg6: memref<433x288xbf16, #tpu.memory_space<vmem>>) attributes {dimension_semantics = [#tpu.dimension_semantics<parallel>], iteration_bounds = array<i64: 2>, scalar_prefetch = 0 : i64, scratch_operands = 1 : i64, tpu.core_type = #tpu.core_type<tc>, window_params = [{pipeline_mode = #tpu.pipeline_mode<synchronous>, transform_indices = @transform_0, window_bounds = array<i64: 128, 433>}, {transform_indices = @transform_1, window_bounds = array<i64: 1, 48, 342>}, {transform_indices = @transform_2, window_bounds = array<i64: 1, 32, 288>}, {transform_indices = @transform_3, window_bounds = array<i64: 1, 32, 288>}, {transform_indices = @transform_4, window_bounds = array<i64: 1, 32, 288>}]} {
    %c0 = arith.constant 0 : index
    %c0_0 = arith.constant 0 : index
    %c0_1 = arith.constant 0 : index
    %0 = vector.load %arg2[%c0, %c0_0, %c0_1] : memref<1x48x342xbf16, #tpu.memory_space<vmem>>, vector<1x48x288xbf16>
    %1 = vector.shape_cast %0 : vector<1x48x288xbf16> to vector<48x288xbf16>
    %c0_2 = arith.constant 0 : index
    %c0_3 = arith.constant 0 : index
    %2 = vector.load %arg6[%c0_2, %c0_3] : memref<433x288xbf16, #tpu.memory_space<vmem>>, vector<48x288xbf16>
    tpu.vector_store %arg6[%c0_2, %c0_3], %1 {strides = array<i32>} : memref<433x288xbf16, #tpu.memory_space<vmem>>, vector<48x288xbf16>,
    %c0_4 = arith.constant 0 : index
    %c0_5 = arith.constant 0 : index
    %c1 = arith.constant 1 : index
    %3 = vector.load %arg2[%c0_4, %c0_5, %c1] : memref<1x48x342xbf16, #tpu.memory_space<vmem>>, vector<1x48x288xbf16>
    %4 = vector.shape_cast %3 : vector<1x48x288xbf16> to vector<48x288xbf16>
    %c48 = arith.constant 48 : index
    %c0_6 = arith.constant 0 : index
    %5 = vector.load %arg6[%c48, %c0_6] : memref<433x288xbf16, #tpu.memory_space<vmem>>, vector<48x288xbf16>
    tpu.vector_store %arg6[%c48, %c0_6], %4 {strides = array<i32>} : memref<433x288xbf16, #tpu.memory_space<vmem>>, vector<48x288xbf16>,
    %c0_7 = arith.constant 0 : index
    %c0_8 = arith.constant 0 : index
    %c2 = arith.constant 2 : index
    %6 = vector.load %arg2[%c0_7, %c0_8, %c2] : memref<1x48x342xbf16, #tpu.memory_space<vmem>>, vector<1x48x288xbf16>
    %7 = vector.shape_cast %6 : vector<1x48x288xbf16> to vector<48x288xbf16>
    %c96 = arith.constant 96 : index
    %c0_9 = arith.constant 0 : index
    %8 = vector.load %arg6[%c96, %c0_9] : memref<433x288xbf16, #tpu.memory_space<vmem>>, vector<48x288xbf16>
    tpu.vector_store %arg6[%c96, %c0_9], %7 {strides = array<i32>} : memref<433x288xbf16, #tpu.memory_space<vmem>>, vector<48x288xbf16>,
    %c0_10 = arith.constant 0 : index
    %c0_11 = arith.constant 0 : index
    %c18 = arith.constant 18 : index
    %9 = vector.load %arg2[%c0_10, %c0_11, %c18] : memref<1x48x342xbf16, #tpu.memory_space<vmem>>, vector<1x48x288xbf16>
    %10 = vector.shape_cast %9 : vector<1x48x288xbf16> to vector<48x288xbf16>
    %c144 = arith.constant 144 : index
    %c0_12 = arith.constant 0 : index
    %11 = vector.load %arg6[%c144, %c0_12] : memref<433x288xbf16, #tpu.memory_space<vmem>>, vector<48x288xbf16>
    tpu.vector_store %arg6[%c144, %c0_12], %10 {strides = array<i32>} : memref<433x288xbf16, #tpu.memory_space<vmem>>, vector<48x288xbf16>,
    %c0_13 = arith.constant 0 : index
    %c0_14 = arith.constant 0 : index
    %c19 = arith.constant 19 : index
    %12 = vector.load %arg2[%c0_13, %c0_14, %c19] : memref<1x48x342xbf16, #tpu.memory_space<vmem>>, vector<1x48x288xbf16>
    %13 = vector.shape_cast %12 : vector<1x48x288xbf16> to vector<48x288xbf16>
    %c192 = arith.constant 192 : index
    %c0_15 = arith.constant 0 : index
    %14 = vector.load %arg6[%c192, %c0_15] : memref<433x288xbf16, #tpu.memory_space<vmem>>, vector<48x288xbf16>
    tpu.vector_store %arg6[%c192, %c0_15], %13 {strides = array<i32>} : memref<433x288xbf16, #tpu.memory_space<vmem>>, vector<48x288xbf16>,
    %c0_16 = arith.constant 0 : index
    %c0_17 = arith.constant 0 : index
    %c20 = arith.constant 20 : index
    %15 = vector.load %arg2[%c0_16, %c0_17, %c20] : memref<1x48x342xbf16, #tpu.memory_space<vmem>>, vector<1x48x288xbf16>
    %16 = vector.shape_cast %15 : vector<1x48x288xbf16> to vector<48x288xbf16>
    %c240 = arith.constant 240 : index
    %c0_18 = arith.constant 0 : index
    %17 = vector.load %arg6[%c240, %c0_18] : memref<433x288xbf16, #tpu.memory_space<vmem>>, vector<48x288xbf16>
    tpu.vector_store %arg6[%c240, %c0_18], %16 {strides = array<i32>} : memref<433x288xbf16, #tpu.memory_space<vmem>>, vector<48x288xbf16>,
    %c0_19 = arith.constant 0 : index
    %c0_20 = arith.constant 0 : index
    %c36 = arith.constant 36 : index
    %18 = vector.load %arg2[%c0_19, %c0_20, %c36] : memref<1x48x342xbf16, #tpu.memory_space<vmem>>, vector<1x48x288xbf16>
    %19 = vector.shape_cast %18 : vector<1x48x288xbf16> to vector<48x288xbf16>
    %c288 = arith.constant 288 : index
    %c0_21 = arith.constant 0 : index
    %20 = vector.load %arg6[%c288, %c0_21] : memref<433x288xbf16, #tpu.memory_space<vmem>>, vector<48x288xbf16>
    tpu.vector_store %arg6[%c288, %c0_21], %19 {strides = array<i32>} : memref<433x288xbf16, #tpu.memory_space<vmem>>, vector<48x288xbf16>,
    %c0_22 = arith.constant 0 : index
    %c0_23 = arith.constant 0 : index
    %c37 = arith.constant 37 : index
    %21 = vector.load %arg2[%c0_22, %c0_23, %c37] : memref<1x48x342xbf16, #tpu.memory_space<vmem>>, vector<1x48x288xbf16>
    %22 = vector.shape_cast %21 : vector<1x48x288xbf16> to vector<48x288xbf16>
    %c336 = arith.constant 336 : index
    %c0_24 = arith.constant 0 : index
    %23 = vector.load %arg6[%c336, %c0_24] : memref<433x288xbf16, #tpu.memory_space<vmem>>, vector<48x288xbf16>
    tpu.vector_store %arg6[%c336, %c0_24], %22 {strides = array<i32>} : memref<433x288xbf16, #tpu.memory_space<vmem>>, vector<48x288xbf16>,
    %c0_25 = arith.constant 0 : index
    %c0_26 = arith.constant 0 : index
    %c38 = arith.constant 38 : index
    %24 = vector.load %arg2[%c0_25, %c0_26, %c38] : memref<1x48x342xbf16, #tpu.memory_space<vmem>>, vector<1x48x288xbf16>
    %25 = vector.shape_cast %24 : vector<1x48x288xbf16> to vector<48x288xbf16>
    %c384 = arith.constant 384 : index
    %c0_27 = arith.constant 0 : index
    %26 = vector.load %arg6[%c384, %c0_27] : memref<433x288xbf16, #tpu.memory_space<vmem>>, vector<48x288xbf16>
    tpu.vector_store %arg6[%c384, %c0_27], %25 {strides = array<i32>} : memref<433x288xbf16, #tpu.memory_space<vmem>>, vector<48x288xbf16>,
    %cst = arith.constant 1.000000e+00 : bf16
    %27 = vector.broadcast %cst : bf16 to vector<1x288xbf16>
    %c432 = arith.constant 432 : index
    %c0_28 = arith.constant 0 : index
    %28 = vector.load %arg6[%c432, %c0_28] : memref<433x288xbf16, #tpu.memory_space<vmem>>, vector<1x288xbf16>
    tpu.vector_store %arg6[%c432, %c0_28], %27 {strides = array<i32>} : memref<433x288xbf16, #tpu.memory_space<vmem>>, vector<1x288xbf16>,
    %c0_29 = arith.constant 0 : index
    %c0_30 = arith.constant 0 : index
    %29 = vector.load %arg1[%c0_29, %c0_30] : memref<128x433xbf16, #tpu.memory_space<vmem>>, vector<128x433xbf16>
    %c0_31 = arith.constant 0 : index
    %c0_32 = arith.constant 0 : index
    %30 = vector.load %arg6[%c0_31, %c0_32] : memref<433x288xbf16, #tpu.memory_space<vmem>>, vector<433x288xbf16>
    %cst_33 = arith.constant dense<0.000000e+00> : vector<128x288xf32>
    %31 = tpu.matmul %29, %30, %cst_33 {dimension_numbers = #tpu.dot_dimension_numbers<[1], [0], [0], [1], [0, 0, 1, 1], [], []>} : vector<128x433xbf16>, vector<433x288xbf16>, vector<128x288xf32> -> vector<128x288xf32>
    %32 = vector.extract_strided_slice %31 {offsets = [0, 0], sizes = [32, 288], strides = [1, 1]} : vector<128x288xf32> to vector<32x288xf32>
    %33 = arith.negf %32 : vector<32x288xf32>
    %34 = math.exp %33 : vector<32x288xf32>
    %cst_34 = arith.constant 1.000000e+00 : f32
    %35 = vector.broadcast %cst_34 : f32 to vector<32x288xf32>
    %36 = arith.addf %35, %34 : vector<32x288xf32>
    %37 = arith.divf %35, %36 : vector<32x288xf32>
    %38 = vector.extract_strided_slice %31 {offsets = [32, 0], sizes = [32, 288], strides = [1, 1]} : vector<128x288xf32> to vector<32x288xf32>
    %39 = arith.negf %38 : vector<32x288xf32>
    %40 = math.exp %39 : vector<32x288xf32>
    %cst_35 = arith.constant 1.000000e+00 : f32
    %41 = vector.broadcast %cst_35 : f32 to vector<32x288xf32>
    %42 = arith.addf %41, %40 : vector<32x288xf32>
    %43 = arith.divf %41, %42 : vector<32x288xf32>
    %44 = vector.extract_strided_slice %31 {offsets = [64, 0], sizes = [32, 288], strides = [1, 1]} : vector<128x288xf32> to vector<32x288xf32>
    %45 = arith.negf %44 : vector<32x288xf32>
    %46 = math.exp %45 : vector<32x288xf32>
    %cst_36 = arith.constant 1.000000e+00 : f32
    %47 = vector.broadcast %cst_36 : f32 to vector<32x288xf32>
    %48 = arith.addf %47, %46 : vector<32x288xf32>
    %49 = arith.divf %47, %48 : vector<32x288xf32>
    %50 = vector.extract_strided_slice %31 {offsets = [96, 0], sizes = [32, 288], strides = [1, 1]} : vector<128x288xf32> to vector<32x288xf32>
    %51 = arith.negf %50 : vector<32x288xf32>
    %52 = math.exp %51 : vector<32x288xf32>
    %cst_37 = arith.constant 1.000000e+00 : f32
    %53 = vector.broadcast %cst_37 : f32 to vector<32x288xf32>
    %54 = arith.addf %53, %52 : vector<32x288xf32>
    %55 = arith.divf %53, %54 : vector<32x288xf32>
    %cst_38 = arith.constant 2.000000e+00 : f32
    %56 = vector.broadcast %cst_38 : f32 to vector<32x288xf32>
    %57 = arith.mulf %56, %55 : vector<32x288xf32>
    %cst_39 = arith.constant 1.000000e+00 : f32
    %58 = vector.broadcast %cst_39 : f32 to vector<32x288xf32>
    %59 = arith.subf %57, %58 : vector<32x288xf32>
    %c0_40 = arith.constant 0 : index
    %c0_41 = arith.constant 0 : index
    %c0_42 = arith.constant 0 : index
    %60 = vector.load %arg3[%c0_40, %c0_41, %c0_42] : memref<1x32x288xf32, #tpu.memory_space<vmem>>, vector<1x32x288xf32>
    %61 = vector.shape_cast %60 : vector<1x32x288xf32> to vector<32x288xf32>
    %62 = arith.mulf %43, %61 : vector<32x288xf32>
    %63 = arith.mulf %37, %59 : vector<32x288xf32>
    %64 = arith.addf %62, %63 : vector<32x288xf32>
    %65 = math.tanh %64 : vector<32x288xf32>
    %66 = arith.mulf %49, %65 : vector<32x288xf32>
    %c0_43 = arith.constant 0 : index
    %c0_44 = arith.constant 0 : index
    %c0_45 = arith.constant 0 : index
    %67 = vector.load %arg4[%c0_43, %c0_44, %c0_45] : memref<1x32x288xf32, #tpu.memory_space<vmem>>, vector<1x32x288xf32>
    %68 = vector.shape_cast %67 : vector<1x32x288xf32> to vector<32x288xf32>
    %69 = vector.shape_cast %66 : vector<32x288xf32> to vector<1x32x288xf32>
    tpu.vector_store %arg4[%c0_43, %c0_44, %c0_45], %69 {strides = array<i32>} : memref<1x32x288xf32, #tpu.memory_space<vmem>>, vector<1x32x288xf32>,
    %c0_46 = arith.constant 0 : index
    %c0_47 = arith.constant 0 : index
    %c0_48 = arith.constant 0 : index
    %70 = vector.load %arg5[%c0_46, %c0_47, %c0_48] : memref<1x32x288xf32, #tpu.memory_space<vmem>>, vector<1x32x288xf32>
    %71 = vector.shape_cast %70 : vector<1x32x288xf32> to vector<32x288xf32>
    %72 = vector.shape_cast %64 : vector<32x288xf32> to vector<1x32x288xf32>
    tpu.vector_store %arg5[%c0_46, %c0_47, %c0_48], %72 {strides = array<i32>} : memref<1x32x288xf32, #tpu.memory_space<vmem>>, vector<1x32x288xf32>,
    return
  }
  func.func @transform_0(%arg0: i32) -> (i32, i32) {
    %c0_i32 = arith.constant 0 : i32
    %c0_i32_0 = arith.constant 0 : i32
    %c0_i32_1 = arith.constant 0 : i32
    return %c0_i32, %c0_i32_0 : i32, i32
  }
  func.func @transform_1(%arg0: i32) -> (i32, i32, i32) {
    %c0_i32 = arith.constant 0 : i32
    %c0_i32_0 = arith.constant 0 : i32
    %c0_i32_1 = arith.constant 0 : i32
    return %arg0, %c0_i32, %c0_i32_0 : i32, i32, i32
  }
  func.func @transform_2(%arg0: i32) -> (i32, i32, i32) {
    %c0_i32 = arith.constant 0 : i32
    %c0_i32_0 = arith.constant 0 : i32
    %c0_i32_1 = arith.constant 0 : i32
    return %arg0, %c0_i32, %c0_i32_0 : i32, i32, i32
  }
  func.func @transform_3(%arg0: i32) -> (i32, i32, i32) {
    %c0_i32 = arith.constant 0 : i32
    %c0_i32_0 = arith.constant 0 : i32
    %c0_i32_1 = arith.constant 0 : i32
    return %arg0, %c0_i32, %c0_i32_0 : i32, i32, i32
  }
  func.func @transform_4(%arg0: i32) -> (i32, i32, i32) {
    %c0_i32 = arith.constant 0 : i32
    %c0_i32_0 = arith.constant 0 : i32
    %c0_i32_1 = arith.constant 0 : i32
    return %arg0, %c0_i32, %c0_i32_0 : i32, i32, i32
  }
}

</mosaic_0001>

<bundles_post_ra>
// kernel: tpu_custom_call.1
= control target key start
LH: loop header
LB: loop body
LE: loop exit
PB: predicated region body
PF: predicated region fallthrough
CT: control target
= control target key end

     0   :  { %10 = vsyncpa [#allocation4], 0  ;;  %s4605_s0 = inlined_call_operand.vmem [shape: bf16[128,433], index: 0, kind: input, shape index: {}]   ;;  %s4606_s1 = inlined_call_operand.vmem [shape: bf16[2,48,342], index: 1, kind: input, shape index: {}]   ;;  %s4607_s2 = inlined_call_operand.vmem [shape: f32[2,32,288], index: 2, kind: input, shape index: {}]   ;;  %s4608_s3 = inlined_call_operand.hbm [shape: f32[2,32,288], index: 3, kind: output, shape index: {0}]   ;;  %s4609_s4 = inlined_call_operand.hbm [shape: f32[2,32,288], index: 4, kind: output, shape index: {1}]  }
   0x1   :  { %12 = vsyncpa [#allocation4 + $0x1], 0 }
   0x2   :  { %13 = vsyncpa [#allocation6], 0 }
   0x3   :  { %15 = vsyncpa [#allocation6 + $0x1], 0  ;;  %s3563_s15 = smov 0   ;;  %s3565_s16 = smov 0  }
   0x4   :  { %s3567_s17 = smov 0   ;;  %s3569_s18 = smov 0  }
   0x5 LB: > { %s3584_s19 = sadd.s32 4294967295, %s3523_s18   ;;  %s2787_s20 = sadd.s32 4294967294, %s3523_s18   ;;  %s3523_s18 = sphi %s3569_s18, %s4615_s18   ;;  %s3519_s17 = sphi %s3567_s17, %s4614_s17   ;;  %s3515_s16 = sphi %s3565_s16, %s4613_s16   ;;  %s3511_s15 = sphi %s3563_s15, %s4612_s15  }
   0x6   : > { %s3588_s21 = sadd.s32 1, %s3523_s18   ;;  %s101_s22 = sadd.s32 1, %s3519_s17 }
   0x7   : > { %s98_s23 = ssub.s32 %s3523_s18, %s3588_s21  ;;  %p111_p0 = scmp.ne.s32.totalorder %s3519_s17, %s3515_s16 }
   0x8   : > { %p99_p1 = scmp.eq.s32.totalorder %s98_s23, 0  ;;  %p112_p2 = scmp.eq.s32.totalorder %s3584_s19, 1 }
   0x9   : > { %p117_p3 = scmp.ne.s32.totalorder %s3515_s16, %s3511_s15  ;;  %p118_p4 = scmp.eq.s32.totalorder %s2787_s20, 1 }
   0xa   : > { %s3599_s24 = scalar_select %p99_p1, %s3519_s17, %s101_s22  }
   0xb   : > { %p3601_p5 = por %p112_p2, %p111_p0  ;;  %p3605_p6 = por %p118_p4, %p117_p3 }
   0xc   : > { %p2790_p7 = scmp.ge.s32.totalorder %s3523_s18, 1  ;;  %p181_p8 = scmp.lt.s32.totalorder %s3523_s18, 3 }
   0xe   : > { %p182_p9 = pnand %p2790_p7, %p181_p8 }
   0xf   : > { %p217_p10 = scmp.lt.s32.totalorder (!%p182_p9), %s3584_s19, 1  ;;  %s3525_s6 = smov (!%p182_p9), 126  }
  0x10   : > { %185 = sbr.rel (%p182_p9) target bundleno = 729 (0x2d9), region = 32  ;;  %s3526_s7 = smov (!%p182_p9), 91  }
  0x11   : > { %s3527_s8 = smov (!%p182_p9), 127   ;;  %s3528_s9 = smov (!%p182_p9), 92  }
  0x12   : > { %s3529_s10 = smov (!%p182_p9), 108   ;;  %s3530_s11 = smov (!%p182_p9), 109  }
  0x13   : > { %s3531_s12 = smov (!%p182_p9), 90   ;;  %s3532_s20 = smov (!%p182_p9), 110  }
  0x14   : > { %s4403_s29 = sand.u32 (!%p182_p9), 1, %s3515_s16   ;;  %s3534_s14 = smov (!%p182_p9), [#allocation5]  }
  0x15   : > { %s3613_s27 = scalar_select %p217_p10, %s3584_s19, 1  ;;  %vm1031_vm0 = vcmask 1040384   ;;  %vm1032_vm1 = vsmask.f32 256  ;;  %vm1034_vm2 = vcmask 1044484   ;;  %vm242_vm7 = vcmask 257024  }
  0x16   : > { %vm1035_vm3 = vsmask.f32 4352  ;;  %vm1033_vm4 = vmand %vm1031_vm0, %vm1032_vm1  ;;  %v1038_v40 = vld [vmem:[#allocation2 + $0x288] sm:$0x11]  ;;  %vm314_vm8 = vcmask 1043456   ;;  %vm413_vm9 = vcmask 1031168  }
  0x17   : > { %s3078_s28 = smul.u32 72, %s3613_s27  ;;  %vm1036_vm5 = vmand %vm1034_vm2, %vm1035_vm3  ;;  %vm898_vm10 = vcmask 744448   ;;  %vm1041_vm11 = vcmask 253952   ;;  %vm316_vm13 = vcmask 1039360   ;;  %vm1780_vm14 = vcmask 400384  }
  0x18   : > { %vm1037_vm6 = vmor %vm1036_vm5, %vm1033_vm4  ;;  %vm801_vm15 = vcmask 752640   ;;  %vm995_vm2 = vcmask 736256   ;;  %vm510_vm3 = vcmask 900096   ;;  %s3079_s22 = smul.u32 96, %s3613_s27  ;;  %vm2623_vm4 = vcmask 261120  }
  0x19   : > { %s3619_s5 = scalar_lea.vmem %s4606_s1, %s3078_s28  ;;  %v1039_v42 = vsel %vm1037_vm6, 1065369472, %v1038_v40  ;;  %vm1042_vm12 = vmand %vm1041_vm11, %vm1032_vm1  ;;  %vm704_vm1 = vcmask 883712   ;;  %s3077_s30 = smul.u32 96, %s4403_s29 }
  0x1a   : > { %v3622_v0 = vld [vmem:[%s3619_s5 + $0x24] sm:$0xff]  ;;  %v3625_v1 = vld [vmem:[%s3619_s5 + $0x18] sm:$0xff]  ;;  %v359_v2 = vld [vmem:[%s3619_s5 + $0x2c] sm:$0xf]  ;;  %1040 = vst [vmem:[#allocation2 + $0x288] sm:$0x11] %v1039_v42  ;;  %s4394_s28 = scalar_lea.vmem %s4607_s2, %s3079_s22 }
  0x1b   : > { %388 = vrot.lane.b32.xlu1 %v3622_v0, %s3525_s6  ;;  %384 = vrot.lane.b32.xlu0 %v3625_v1, %s3525_s6  ;;  %v357_v3 = vld [vmem:[%s3619_s5 + $0x20] sm:$0xf]  ;;  %v3634_v4 = vld [vmem:[%s3619_s5 + $0x30] sm:$0xff] }
  0x1c   : > { %v3637_v5 = vld [vmem:[%s3619_s5 + $0x3c] sm:$0xff]  ;;  %v846_v6 = vld [vmem:[%s3619_s5 + $0x38] sm:$0xf]  ;;  %v848_v7 = vld [vmem:[%s3619_s5 + $0x44] sm:$0xf] }
  0x1d   : > { %v353_v8 = vld [vmem:[%s3619_s5 + $0x8] sm:$0xf]  ;;  %v3651_v9 = vld [vmem:[%s3619_s5] sm:$0xff]  ;;  %v355_v10 = vld [vmem:[%s3619_s5 + $0x14] sm:$0xf] }
  0x1e   : > { %v3655_v11 = vld [vmem:[%s3619_s5 + $0xc] sm:$0xff]  ;;  %v842_v12 = vld [vmem:[%s3619_s5 + $0x20] sm:$0xf]  ;;  %v263_v14 = vld [vmem:[%s3619_s5 + $0x38] sm:$0xf] }
  0x1f   : > { %390 = vrot.lane.b32.xlu1 %v359_v2, %s3525_s6  ;;  %386 = vrot.lane.b32.xlu0 %v357_v3, %s3525_s6  ;;  %v844_v13 = vld [vmem:[%s3619_s5 + $0x2c] sm:$0xf]  ;;  %v265_v15 = vld [vmem:[%s3619_s5 + $0x44] sm:$0xf] }
  0x20   : > { %v838_v16 = vld [vmem:[%s3619_s5 + $0x8] sm:$0xf]  ;;  %v840_v17 = vld [vmem:[%s3619_s5 + $0x14] sm:$0xf]  ;;  %v259_v18 = vld [vmem:[%s3619_s5 + $0x20] sm:$0xf] }
  0x21   : > { %v261_v19 = vld [vmem:[%s3619_s5 + $0x2c] sm:$0xf]  ;;  %v749_v20 = vld [vmem:[%s3619_s5 + $0x38] sm:$0xf]  ;;  %v751_v21 = vld [vmem:[%s3619_s5 + $0x44] sm:$0xf] }
  0x22   : > { %v255_v22 = vld [vmem:[%s3619_s5 + $0x8] sm:$0xf]  ;;  %v257_v23 = vld [vmem:[%s3619_s5 + $0x14] sm:$0xf]  ;;  %v745_v24 = vld [vmem:[%s3619_s5 + $0x20] sm:$0xf] }
  0x23   : > { %879 = vrot.lane.b32.xlu1 %v846_v6, %s3526_s7  ;;  %877 = vrot.lane.b32.xlu0 %v3634_v4, %s3526_s7  ;;  %v747_v25 = vld [vmem:[%s3619_s5 + $0x2c] sm:$0xf]  ;;  %v741_v26 = vld [vmem:[%s3619_s5 + $0x8] sm:$0xf]  ;;  %v1043_v6 = vld [vmem:[#allocation2 + $0x290] sm:$0x1] }
  0x24   : > { %v743_v27 = vld [vmem:[%s3619_s5 + $0x14] sm:$0xf]  ;;  %v652_v28 = vld [vmem:[%s3619_s5 + $0x38] sm:$0xf]  ;;  %v654_v29 = vld [vmem:[%s3619_s5 + $0x44] sm:$0xf] }
  0x25   : > { %v3709_v30 = vld [vmem:[%s3619_s5 + $0x18] sm:$0xff]  ;;  %v3712_v31 = vld [vmem:[%s3619_s5 + $0x24] sm:$0xff]  ;;  %v648_v34 = vld [vmem:[%s3619_s5 + $0x20] sm:$0xf] }
  0x26   : > { %v2829_v32 = vcombine.high %v3709_v30, %v3712_v31  ;;  %v2828_v33 = vcombine.low %v3709_v30, %v3712_v31  ;;  %v3723_v35 = vld [vmem:[%s3619_s5] sm:$0xff]  ;;  %v3726_v36 = vld [vmem:[%s3619_s5 + $0xc] sm:$0xff]  ;;  %v644_v41 = vld [vmem:[%s3619_s5 + $0x8] sm:$0xf] }
  0x27   : > { %883 = vrot.lane.b32.xlu1 %v848_v7, %s3526_s7  ;;  %881 = vrot.lane.b32.xlu0 %v3637_v5, %s3526_s7  ;;  %v2826_v37 = vcombine.high %v3723_v35, %v3726_v36  ;;  %v650_v38 = vld [vmem:[%s3619_s5 + $0x2c] sm:$0xf]  ;;  %v2825_v39 = vcombine.low %v3723_v35, %v3726_v36  ;;  %v646_v43 = vld [vmem:[%s3619_s5 + $0x14] sm:$0xf] }
  0x28   : > { %v555_v44 = vld [vmem:[%s3619_s5 + $0x38] sm:$0xf]  ;;  %v557_v45 = vld [vmem:[%s3619_s5 + $0x44] sm:$0xf]  ;;  %v941_v42 = vld [vmem:[%s3619_s5 + $0x2c] sm:$0xf] }
  0x29   : > { %v943_v48 = vld [vmem:[%s3619_s5 + $0x38] sm:$0xf]  ;;  %v945_v57 = vld [vmem:[%s3619_s5 + $0x44] sm:$0xf] }
  0x2b   : > { %378 = vrot.lane.b32.xlu1 %v353_v8, %s3525_s6  ;;  %376 = vrot.lane.b32.xlu0 %v3651_v9, %s3525_s6  ;;  %v551_v8 = vld [vmem:[%s3619_s5 + $0x20] sm:$0xf] }
  0x2f   : > { %382 = vrot.lane.b32.xlu1 %v355_v10, %s3525_s6  ;;  %380 = vrot.lane.b32.xlu0 %v3655_v11, %s3525_s6 }
  0x33   : > { %871 = vrot.lane.b32.xlu1 %v842_v12, %s3526_s7  ;;  %869 = vrot.lane.b32.xlu0 %v3625_v1, %s3526_s7 }
  0x37   : > { %875 = vrot.lane.b32.xlu1 %v844_v13, %s3526_s7  ;;  %873 = vrot.lane.b32.xlu0 %v3622_v0, %s3526_s7 }
  0x3b   : > { %296 = vrot.lane.b32.xlu1 %v263_v14, %s3527_s8  ;;  %294 = vrot.lane.b32.xlu0 %v3634_v4, %s3527_s8  ;;  %v1044_v14 = vsel %vm1042_vm12, 1065369472, %v1043_v6 }
  0x3c   : > { %1045 = vst [vmem:[#allocation2 + $0x290] sm:$0x1] %v1044_v14 }
  0x3f   : > { %300 = vrot.lane.b32.xlu1 %v265_v15, %s3527_s8  ;;  %298 = vrot.lane.b32.xlu0 %v3637_v5, %s3527_s8 }
  0x43   : > { %863 = vrot.lane.b32.xlu1 %v838_v16, %s3526_s7  ;;  %861 = vrot.lane.b32.xlu0 %v3651_v9, %s3526_s7 }
  0x47   : > { %867 = vrot.lane.b32.xlu1 %v840_v17, %s3526_s7  ;;  %865 = vrot.lane.b32.xlu0 %v3655_v11, %s3526_s7  ;;  %s3080_s7 = smul.u32 1536, %s3584_s19 }
  0x4b   : > { %288 = vrot.lane.b32.xlu1 %v259_v18, %s3527_s8  ;;  %286 = vrot.lane.b32.xlu0 %v3625_v1, %s3527_s8  ;;  %v553_v18 = vld [vmem:[%s3619_s5 + $0x2c] sm:$0xf] }
  0x4f   : > { %292 = vrot.lane.b32.xlu1 %v261_v19, %s3527_s8  ;;  %290 = vrot.lane.b32.xlu0 %v3622_v0, %s3527_s8 }
  0x53   : > { %782 = vrot.lane.b32.xlu1 %v749_v20, %s3528_s9  ;;  %780 = vrot.lane.b32.xlu0 %v3634_v4, %s3528_s9 }
  0x57   : > { %786 = vrot.lane.b32.xlu1 %v751_v21, %s3528_s9  ;;  %784 = vrot.lane.b32.xlu0 %v3637_v5, %s3528_s9 }
  0x5b   : > { %280 = vrot.lane.b32.xlu1 %v255_v22, %s3527_s8  ;;  %278 = vrot.lane.b32.xlu0 %v3651_v9, %s3527_s8 }
  0x5f   : > { %284 = vrot.lane.b32.xlu1 %v257_v23, %s3527_s8  ;;  %282 = vrot.lane.b32.xlu0 %v3655_v11, %s3527_s8 }
  0x63   : > { %774 = vrot.lane.b32.xlu1 %v745_v24, %s3528_s9  ;;  %772 = vrot.lane.b32.xlu0 %v3625_v1, %s3528_s9 }
  0x67   : > { %778 = vrot.lane.b32.xlu1 %v747_v25, %s3528_s9  ;;  %776 = vrot.lane.b32.xlu0 %v3622_v0, %s3528_s9 }
  0x6b   : > { %766 = vrot.lane.b32.xlu1 %v741_v26, %s3528_s9  ;;  %764 = vrot.lane.b32.xlu0 %v3651_v9, %s3528_s9 }
  0x6f   : > { %770 = vrot.lane.b32.xlu1 %v743_v27, %s3528_s9  ;;  %768 = vrot.lane.b32.xlu0 %v3655_v11, %s3528_s9  ;;  %v939_v27 = vld [vmem:[%s3619_s5 + $0x20] sm:$0xf] }
  0x73   : > { %685 = vrot.lane.b32.xlu1 %v652_v28, %s3529_s10  ;;  %683 = vrot.lane.b32.xlu0 %v3634_v4, %s3529_s10 }
  0x77   : > { %689 = vrot.lane.b32.xlu1 %v654_v29, %s3529_s10  ;;  %687 = vrot.lane.b32.xlu0 %v3637_v5, %s3529_s10 }
  0x7b   : > { %677 = vrot.lane.b32.xlu1 %v648_v34, %s3529_s10  ;;  %675 = vrot.lane.b32.xlu0 %v3625_v1, %s3529_s10 }
  0x7f   : > { %681 = vrot.lane.b32.xlu1 %v650_v38, %s3529_s10  ;;  %679 = vrot.lane.b32.xlu0 %v3622_v0, %s3529_s10 }
  0x83   : > { %669 = vrot.lane.b32.xlu1 %v644_v41, %s3529_s10  ;;  %667 = vrot.lane.b32.xlu0 %v3651_v9, %s3529_s10 }
  0x87   : > { %673 = vrot.lane.b32.xlu1 %v646_v43, %s3529_s10  ;;  %671 = vrot.lane.b32.xlu0 %v3655_v11, %s3529_s10 }
  0x8b   : > { %588 = vrot.lane.b32.xlu1 %v555_v44, %s3530_s11  ;;  %586 = vrot.lane.b32.xlu0 %v3634_v4, %s3530_s11 }
  0x8d   : > { %v389_v46 = vpop.permute.xlu1 %388  ;;  %v385_v47 = vpop.permute.xlu0 %384 }
  0x8e   : > { %v406_v51 = vrot.slane %v389_v46, 4  ;;  %v404_v52 = vrot.slane %v385_v47, 4 }
  0x8f   : > { %592 = vrot.lane.b32.xlu1 %v557_v45, %s3530_s11  ;;  %590 = vrot.lane.b32.xlu0 %v3637_v5, %s3530_s11 }
  0x91   : > { %v391_v49 = vpop.permute.xlu1 %390  ;;  %v387_v50 = vpop.permute.xlu0 %386 }
  0x92   : > { %v407_v53 = vrot.slane %v391_v49, 4  ;;  %444 = vst.msk [vmem:[#allocation2 + $0xbc] sm:$0xf] %vm242_vm7, %v391_v49  ;;  %v405_v54 = vrot.slane %v387_v50, 4  ;;  %442 = vst.msk [vmem:[#allocation2 + $0xb0] sm:$0xf] %vm242_vm7, %v387_v50 }
  0x93   : > { %976 = vrot.lane.b32.xlu1 %v943_v48, %s3531_s12  ;;  %974 = vrot.lane.b32.xlu0 %v3634_v4, %s3531_s12 }
  0x94   : > { %v419_v55 = vsel %vm314_vm8, %v406_v51, %v407_v53  ;;  %v417_v56 = vsel %vm314_vm8, %v404_v52, %v405_v54  ;;  %v547_v51 = vld [vmem:[%s3619_s5 + $0x8] sm:$0xf] }
  0x95   : > { %v420_v58 = vsel %vm413_vm9, %v389_v46, %v419_v55  ;;  %v418_v59 = vsel %vm413_vm9, %v385_v47, %v417_v56  ;;  %v880_v60 = vpop.permute.xlu1 %879  ;;  %v878_v61 = vpop.permute.xlu0 %877 }
  0x96   : > { %v894_v62 = vrot.slane %v880_v60, 4  ;;  %931 = vst.msk [vmem:[#allocation2 + $0x230] sm:$0xf] %vm242_vm7, %v880_v60  ;;  %v893_v63 = vrot.slane %v878_v61, 4  ;;  %v2847_v2 = vcombine.high %v418_v59, %v420_v58  ;;  %v2846_v3 = vcombine.low %v418_v59, %v420_v58  ;;  %v549_v58 = vld [vmem:[%s3619_s5 + $0x14] sm:$0xf] }
  0x97   : > { %980 = vrot.lane.b32.xlu1 %v945_v57, %s3531_s12  ;;  %978 = vrot.lane.b32.xlu0 %v3637_v5, %s3531_s12 }
  0x98   : > { %v906_v7 = vsel %vm314_vm8, %v893_v63, %v894_v62  ;;  %1817 = vmatprep.subr.bf16.mxu0 %v2847_v2 }
  0x99   : > { %v907_v10 = vsel %vm898_vm10, %v878_v61, %v906_v7  ;;  %v884_v12 = vpop.permute.xlu1 %883  ;;  %v882_v13 = vpop.permute.xlu0 %881  ;;  %1818 = vmatpush1.bf16.msra.mxu0 %v2846_v3  ;;  %v935_v7 = vld [vmem:[%s3619_s5 + $0x8] sm:$0xf] }
  0x9a   : > { %v896_v15 = vrot.slane %v884_v12, 4  ;;  %933 = vst.msk [vmem:[#allocation2 + $0x23c] sm:$0xf] %vm242_vm7, %v884_v12  ;;  %v895_v16 = vrot.slane %v882_v13, 4 }
  0x9b   : > { %580 = vrot.lane.b32.xlu1 %v551_v8, %s3530_s11  ;;  %578 = vrot.lane.b32.xlu0 %v3625_v1, %s3530_s11 }
  0x9c   : > { %v908_v17 = vsel %vm314_vm8, %v895_v16, %v896_v15 }
  0x9d   : > { %v909_v19 = vsel %vm898_vm10, %v882_v13, %v908_v17  ;;  %v379_v20 = vpop.permute.xlu1 %378  ;;  %v377_v21 = vpop.permute.xlu0 %376  ;;  %v3143_v13 = vld [vmem:[%s4605_s0 + $0xc] ss:$16 sps:$4 sm:$0xff]   ;;  %v937_v17 = vld [vmem:[%s3619_s5 + $0x14] sm:$0xf] }
  0x9e   : > { %v401_v22 = vrot.slane %v379_v20, 4  ;;  %438 = vst.msk [vmem:[#allocation2 + $0x98] sm:$0xf] %vm242_vm7, %v379_v20  ;;  %v400_v23 = vrot.slane %v377_v21, 4  ;;  %v2895_v24 = vcombine.high %v907_v10, %v909_v19  ;;  %v2894_v25 = vcombine.low %v907_v10, %v909_v19  ;;  %2909 = vmatprep.mubr.msk.bf16.mxu1 %vm1780_vm14, %v3143_v13 }
  0x9f   : > { %584 = vrot.lane.b32.xlu1 %v553_v18, %s3530_s11  ;;  %582 = vrot.lane.b32.xlu0 %v3622_v0, %s3530_s11 }
  0xa0   : > { %v412_v26 = vsel %vm314_vm8, %v400_v23, %v401_v22  ;;  %1930 = vmatprep.subr.bf16.mxu1 %v2895_v24 }
  0xa1   : > { %v414_v28 = vsel %vm413_vm9, %v377_v21, %v412_v26  ;;  %v383_v29 = vpop.permute.xlu1 %382  ;;  %v381_v34 = vpop.permute.xlu0 %380  ;;  %1931 = vmatpush1.bf16.msra.mxu1 %v2894_v25  ;;  %v458_v26 = vld [vmem:[%s3619_s5 + $0x38] sm:$0xf] }
  0xa2   : > { %v403_v38 = vrot.slane %v383_v29, 4  ;;  %440 = vst.msk [vmem:[#allocation2 + $0xa4] sm:$0xf] %vm242_vm7, %v383_v29  ;;  %v402_v40 = vrot.slane %v381_v34, 4 }
  0xa3   : > { %968 = vrot.lane.b32.xlu1 %v939_v27, %s3531_s12  ;;  %966 = vrot.lane.b32.xlu0 %v3625_v1, %s3531_s12 }
  0xa4   : > { %v415_v41 = vsel %vm314_vm8, %v402_v40, %v403_v38 }
  0xa5   : > { %v416_v43 = vsel %vm413_vm9, %v381_v34, %v415_v41  ;;  %v872_v44 = vpop.permute.xlu1 %871  ;;  %v870_v45 = vpop.permute.xlu0 %869  ;;  %v460_v41 = vld [vmem:[%s3619_s5 + $0x44] sm:$0xf] }
  0xa6   : > { %v890_v46 = vrot.slane %v872_v44, 4  ;;  %927 = vst.msk [vmem:[#allocation2 + $0x218] sm:$0xf] %vm242_vm7, %v872_v44  ;;  %v889_v47 = vrot.slane %v870_v45, 4  ;;  %v2844_v48 = vcombine.high %v414_v28, %v416_v43  ;;  %v2843_v49 = vcombine.low %v414_v28, %v416_v43 }
  0xa7   : > { %972 = vrot.lane.b32.xlu1 %v941_v42, %s3531_s12  ;;  %970 = vrot.lane.b32.xlu0 %v3622_v0, %s3531_s12 }
  0xa8   : > { %v902_v50 = vsel %vm314_vm8, %v889_v47, %v890_v46  ;;  %1819 = vmatprep.subr.bf16.mxu0 %v2844_v48 }
  0xa9   : > { %v903_v52 = vsel %vm898_vm10, %v870_v45, %v902_v50  ;;  %v876_v53 = vpop.permute.xlu1 %875  ;;  %v874_v54 = vpop.permute.xlu0 %873  ;;  %1820 = vmatpush1.bf16.msra.mxu0 %v2843_v49  ;;  %v454_v50 = vld [vmem:[%s3619_s5 + $0x20] sm:$0xf] }
  0xaa   : > { %v892_v55 = vrot.slane %v876_v53, 4  ;;  %929 = vst.msk [vmem:[#allocation2 + $0x224] sm:$0xf] %vm242_vm7, %v876_v53  ;;  %v891_v56 = vrot.slane %v874_v54, 4 }
  0xab   : > { %572 = vrot.lane.b32.xlu1 %v547_v51, %s3530_s11  ;;  %570 = vrot.lane.b32.xlu0 %v3651_v9, %s3530_s11 }
  0xac   : > { %v904_v57 = vsel %vm314_vm8, %v891_v56, %v892_v55  ;;  %v240_v55 = vld [vmem:[%s3619_s5 + $0x44] sm:$0xf] }
  0xad   : > { %v905_v59 = vsel %vm898_vm10, %v874_v54, %v904_v57  ;;  %v297_v60 = vpop.permute.xlu1 %296  ;;  %v295_v61 = vpop.permute.xlu0 %294  ;;  %v238_v54 = vld [vmem:[%s3619_s5 + $0x38] sm:$0xf]  ;;  %253 = vst.msk [vmem:[#allocation2 + $0x44] sm:$0xf] %vm242_vm7, %v240_v55 }
  0xae   : > { %v311_v62 = vrot.slane %v297_v60, 4  ;;  %349 = vst.msk [vmem:[#allocation2 + $0x80] sm:$0xf] %vm242_vm7, %v297_v60  ;;  %v310_v63 = vrot.slane %v295_v61, 4  ;;  %v2892_v2 = vcombine.high %v903_v52, %v905_v59  ;;  %v2891_v3 = vcombine.low %v903_v52, %v905_v59  ;;  %251 = vst.msk [vmem:[#allocation2 + $0x38] sm:$0xf] %vm242_vm7, %v238_v54 }
  0xaf   : > { %576 = vrot.lane.b32.xlu1 %v549_v58, %s3530_s11  ;;  %574 = vrot.lane.b32.xlu0 %v3655_v11, %s3530_s11  ;;  %v456_v59 = vld [vmem:[%s3619_s5 + $0x2c] sm:$0xf]  ;;  %s4514_s11 = scalar_lea.hbm %s4609_s4, %s3080_s7 }
  0xb0   : > { %v324_v6 = vsel %vm314_vm8, %v310_v63, %v311_v62  ;;  %1932 = vmatprep.subr.bf16.mxu1 %v2892_v2 }
  0xb1   : > { %v325_v8 = vsel %vm316_vm13, %v295_v61, %v324_v6  ;;  %v301_v10 = vpop.permute.xlu1 %300  ;;  %v299_v12 = vpop.permute.xlu0 %298  ;;  %1933 = vmatpush1.bf16.msra.mxu1 %v2891_v3 }
  0xb2   : > { %v313_v14 = vrot.slane %v301_v10, 4  ;;  %351 = vst.msk [vmem:[#allocation2 + $0x8c] sm:$0xf] %vm242_vm7, %v301_v10  ;;  %v312_v15 = vrot.slane %v299_v12, 4 }
  0xb3   : > { %960 = vrot.lane.b32.xlu1 %v935_v7, %s3531_s12  ;;  %958 = vrot.lane.b32.xlu0 %v3651_v9, %s3531_s12  ;;  %v450_v7 = vld [vmem:[%s3619_s5 + $0x8] sm:$0xf] }
  0xb4   : > { %v326_v16 = vsel %vm314_vm8, %v312_v15, %v313_v14  ;;  %v452_v15 = vld [vmem:[%s3619_s5 + $0x14] sm:$0xf] }
  0xb5   : > { %v327_v18 = vsel %vm316_vm13, %v299_v12, %v326_v16  ;;  %v864_v19 = vpop.permute.xlu1 %863  ;;  %v862_v20 = vpop.permute.xlu0 %861  ;;  %v234_v16 = vld [vmem:[%s3619_s5 + $0x20] sm:$0xf] }
  0xb6   : > { %v886_v21 = vrot.slane %v864_v19, 4  ;;  %923 = vst.msk [vmem:[#allocation2 + $0x200] sm:$0xf] %vm242_vm7, %v864_v19  ;;  %v885_v22 = vrot.slane %v862_v20, 4  ;;  %v2841_v23 = vcombine.high %v325_v8, %v327_v18  ;;  %v2840_v24 = vcombine.low %v325_v8, %v327_v18  ;;  %247 = vst.msk [vmem:[#allocation2 + $0x20] sm:$0xf] %vm242_vm7, %v234_v16 }
  0xb7   : > { %964 = vrot.lane.b32.xlu1 %v937_v17, %s3531_s12  ;;  %962 = vrot.lane.b32.xlu0 %v3655_v11, %s3531_s12  ;;  %v236_v17 = vld [vmem:[%s3619_s5 + $0x2c] sm:$0xf]  ;;  %s2652_s12 = scalar_lea.sflag [#allocation6], %s4403_s29 }
  0xb8   : > { %v897_v25 = vsel %vm314_vm8, %v885_v22, %v886_v21  ;;  %1821 = vmatprep.subr.bf16.mxu0 %v2841_v23  ;;  %249 = vst.msk [vmem:[#allocation2 + $0x2c] sm:$0xf] %vm242_vm7, %v236_v17 }
  0xb9   : > { %v899_v27 = vsel %vm898_vm10, %v862_v20, %v897_v25  ;;  %v868_v28 = vpop.permute.xlu1 %867  ;;  %v866_v29 = vpop.permute.xlu0 %865  ;;  %1822 = vmatpush1.bf16.msra.mxu0 %v2840_v24  ;;  %v361_v25 = vld [vmem:[%s3619_s5 + $0x38] sm:$0xf] }
  0xba   : > { %v888_v34 = vrot.slane %v868_v28, 4  ;;  %925 = vst.msk [vmem:[#allocation2 + $0x20c] sm:$0xf] %vm242_vm7, %v868_v28  ;;  %v887_v38 = vrot.slane %v866_v29, 4 }
  0xbb   : > { %491 = vrot.lane.b32.xlu1 %v458_v26, %s3532_s20  ;;  %489 = vrot.lane.b32.xlu0 %v3634_v4, %s3532_s20 }
  0xbc   : > { %v900_v40 = vsel %vm314_vm8, %v887_v38, %v888_v34  ;;  %v3890_v38 = vld [vmem:[%s4605_s0 + $0x4] ss:$16 sps:$4 sm:$0xff]  }
  0xbd   : > { %v901_v42 = vsel %vm898_vm10, %v866_v29, %v900_v40  ;;  %v289_v43 = vpop.permute.xlu1 %288  ;;  %v287_v44 = vpop.permute.xlu0 %286  ;;  %v363_v40 = vld [vmem:[%s3619_s5 + $0x44] sm:$0xf]  ;;  %1849 = vmatprep.mubr.bf16.mxu0 %v3890_v38 }
  0xbe   : > { %v307_v45 = vrot.slane %v289_v43, 4  ;;  %345 = vst.msk [vmem:[#allocation2 + $0x68] sm:$0xf] %vm242_vm7, %v289_v43  ;;  %v306_v46 = vrot.slane %v287_v44, 4  ;;  %v2889_v47 = vcombine.high %v899_v27, %v901_v42  ;;  %v2888_v48 = vcombine.low %v899_v27, %v901_v42 }
  0xbf   : > { %495 = vrot.lane.b32.xlu1 %v460_v41, %s3532_s20  ;;  %493 = vrot.lane.b32.xlu0 %v3637_v5, %s3532_s20 }
  0xc0   : > { %v320_v49 = vsel %vm314_vm8, %v306_v46, %v307_v45  ;;  %1934 = vmatprep.subr.bf16.mxu1 %v2889_v47 }
  0xc1   : > { %v321_v51 = vsel %vm316_vm13, %v287_v44, %v320_v49  ;;  %v293_v52 = vpop.permute.xlu1 %292  ;;  %v291_v53 = vpop.permute.xlu0 %290  ;;  %1935 = vmatpush1.bf16.msra.mxu1 %v2888_v48  ;;  %v2832_v44 = vcombine.high %v3634_v4, %v3637_v5 }
  0xc2   : > { %v309_v56 = vrot.slane %v293_v52, 4  ;;  %347 = vst.msk [vmem:[#allocation2 + $0x74] sm:$0xf] %vm242_vm7, %v293_v52  ;;  %v308_v57 = vrot.slane %v291_v53, 4 }
  0xc3   : > { %483 = vrot.lane.b32.xlu1 %v454_v50, %s3532_s20  ;;  %481 = vrot.lane.b32.xlu0 %v3625_v1, %s3532_s20 }
  0xc4   : > { %v322_v58 = vsel %vm314_vm8, %v308_v57, %v309_v56 }
  0xc5   : > { %v323_v60 = vsel %vm316_vm13, %v291_v53, %v322_v58  ;;  %v783_v61 = vpop.permute.xlu1 %782  ;;  %v781_v62 = vpop.permute.xlu0 %780  ;;  %v2831_v53 = vcombine.low %v3634_v4, %v3637_v5 }
  0xc6   : > { %v797_v63 = vrot.slane %v783_v61, 4  ;;  %834 = vst.msk [vmem:[#allocation2 + $0x1e8] sm:$0xf] %vm242_vm7, %v783_v61  ;;  %v796_v2 = vrot.slane %v781_v62, 4  ;;  %v2838_v3 = vcombine.high %v321_v51, %v323_v60  ;;  %v2837_v6 = vcombine.low %v321_v51, %v323_v60 }
  0xc7   : > { %487 = vrot.lane.b32.xlu1 %v456_v59, %s3532_s20  ;;  %485 = vrot.lane.b32.xlu0 %v3622_v0, %s3532_s20 }
  0xc8   : > { %v809_v1 = vsel %vm314_vm8, %v796_v2, %v797_v63  ;;  %1823 = vmatprep.subr.bf16.mxu0 %v2838_v3 }
  0xc9   : > { %v810_v8 = vsel %vm801_vm15, %v781_v62, %v809_v1  ;;  %v787_v10 = vpop.permute.xlu1 %786  ;;  %v785_v12 = vpop.permute.xlu0 %784  ;;  %1824 = vmatpush1.bf16.msra.mxu0 %v2837_v6 }
  0xca   : > { %v799_v13 = vrot.slane %v787_v10, 4  ;;  %836 = vst.msk [vmem:[#allocation2 + $0x1f4] sm:$0xf] %vm242_vm7, %v787_v10  ;;  %v798_v14 = vrot.slane %v785_v12, 4 }
  0xcb   : > { %475 = vrot.lane.b32.xlu1 %v450_v7, %s3532_s20  ;;  %473 = vrot.lane.b32.xlu0 %v3651_v9, %s3532_s20 }
  0xcc   : > { %v811_v0 = vsel %vm314_vm8, %v798_v14, %v799_v13  ;;  %v230_v13 = vld [vmem:[%s3619_s5 + $0x8] sm:$0xf]  ;;  %v232_v14 = vld [vmem:[%s3619_s5 + $0x14] sm:$0xf]  ;;  %s4441_s5 = scalar_lea.vmem [#allocation5], %s3077_s30 }
  0xcd   : > { %v812_v18 = vsel %vm801_vm15, %v785_v12, %v811_v0  ;;  %v281_v19 = vpop.permute.xlu1 %280  ;;  %v279_v20 = vpop.permute.xlu0 %278  ;;  %243 = vst.msk [vmem:[#allocation2 + $0x8] sm:$0xf] %vm242_vm7, %v230_v13  ;;  %245 = vst.msk [vmem:[#allocation2 + $0x14] sm:$0xf] %vm242_vm7, %v232_v14  ;;  %s2681_s8 = sshll.u32 %s4441_s5, 4  ;;  %s4516_s8 = int_to_ptr.vmem [resolvable:$true] %s2681_s8 }
  0xce   : > { %v303_v21 = vrot.slane %v281_v19, 4  ;;  %341 = vst.msk [vmem:[#allocation2 + $0x50] sm:$0xf] %vm242_vm7, %v281_v19  ;;  %v302_v22 = vrot.slane %v279_v20, 4  ;;  %v2886_v23 = vcombine.high %v810_v8, %v812_v18  ;;  %v2885_v9 = vcombine.low %v810_v8, %v812_v18  ;;  %s3433_s13 = scalar_lea.vmem %s4516_s8, 1536 }
  0xcf   : > { %479 = vrot.lane.b32.xlu1 %v452_v15, %s3532_s20  ;;  %477 = vrot.lane.b32.xlu0 %v3655_v11, %s3532_s20  ;;  %p3434_p11 = scmp.ne.s32.totalorder %s4516_s8, %s3433_s13  ;;  %s3437_s20 = sshll.u32 %s3534_s14, 4  ;;  %s3438_s20 = int_to_ptr.vmem [resolvable:$false] %s3437_s20 }
  0xd0   : > { %v315_v24 = vsel %vm314_vm8, %v302_v22, %v303_v21  ;;  %1936 = vmatprep.subr.bf16.mxu1 %v2886_v23  ;;  %s3439_s22 = scalar_lea.vmem %s3438_s20, 3072  ;;  %p3440_p0 = scmp.lt.s32.totalorder %s4516_s8, %s3438_s20 }
  0xd1   : > { %v317_v26 = vsel %vm316_vm13, %v279_v20, %v315_v24  ;;  %v285_v27 = vpop.permute.xlu1 %284  ;;  %v283_v28 = vpop.permute.xlu0 %282  ;;  %1937 = vmatpush1.bf16.msra.mxu1 %v2885_v9  ;;  %v1186_v9 = vld [vmem:[#allocation2 + $0x288] sm:$0x11]  ;;  %p3435_p12 = pnand %p3434_p11, %p3601_p5  ;;  %p3441_p1 = scmp.lt.s32.totalorder %s3439_s22, %s3433_s13 }
  0xd2   : > { %v305_v29 = vrot.slane %v285_v27, 4  ;;  %343 = vst.msk [vmem:[#allocation2 + $0x5c] sm:$0xf] %vm242_vm7, %v285_v27  ;;  %v304_v34 = vrot.slane %v283_v28, 4 }
  0xd3   : > { %394 = vrot.lane.b32.xlu1 %v361_v25, %s3525_s6  ;;  %392 = vrot.lane.b32.xlu0 %v3634_v4, %s3525_s6  ;;  %p3436_p13 = pneg %p3435_p12  ;;  %p3442_p2 = por %p3441_p1, %p3440_p0 }
  0xd4   : > { %v318_v11 = vsel %vm314_vm8, %v304_v34, %v305_v29 }
  0xd5   : > { %v319_v41 = vsel %vm316_vm13, %v283_v28, %v318_v11  ;;  %v775_v42 = vpop.permute.xlu1 %774  ;;  %v773_v43 = vpop.permute.xlu0 %772  ;;  %v2907_v28 = vcombine.high %v1186_v9, %v1186_v9  ;;  %v3533_v11 = vmov 0   ;;  %p3443_p3 = pnand %p3442_p2, %p3436_p13 }
  0xd6   : > { %v793_v45 = vrot.slane %v775_v42, 4  ;;  %830 = vst.msk [vmem:[#allocation2 + $0x1d0] sm:$0xf] %vm242_vm7, %v775_v42  ;;  %v792_v46 = vrot.slane %v773_v43, 4  ;;  %v2835_v47 = vcombine.high %v317_v26, %v319_v41  ;;  %v2834_v48 = vcombine.low %v317_v26, %v319_v41 }
  0xd7   : > { %398 = vrot.lane.b32.xlu1 %v363_v40, %s3525_s6  ;;  %396 = vrot.lane.b32.xlu0 %v3637_v5, %s3525_s6  ;;  %v3946_v40 = vsel %vm1031_vm0, 65535, %v3533_v11  ;;  %vm607_vm0 = vcmask 891904   ;;  %s4469_s6 = scalar_lea.vmem [#allocation3], %s3077_s30 }
  0xd8   : > { %v805_v49 = vsel %vm314_vm8, %v792_v46, %v793_v45  ;;  %1825 = vmatprep.subr.bf16.mxu0 %v2835_v47  ;;  %v1812_v45 = vand.u32 %v2907_v28, %v3946_v40  ;;  %v2906_v46 = vcombine.low %v1186_v9, %v1186_v9 }
  0xd9   : > { %v806_v50 = vsel %vm801_vm15, %v773_v43, %v805_v49  ;;  %v779_v51 = vpop.permute.xlu1 %778  ;;  %v777_v52 = vpop.permute.xlu0 %776  ;;  %1826 = vmatpush1.bf16.msra.mxu0 %v2834_v48 }
  0xda   : > { %v795_v54 = vrot.slane %v779_v51, 4  ;;  %832 = vst.msk [vmem:[#allocation2 + $0x1dc] sm:$0xf] %vm242_vm7, %v779_v51  ;;  %v794_v55 = vrot.slane %v777_v52, 4  ;;  %1827 = vmatprep.subr.bf16.mxu0 %v2832_v44 }
  0xdc   : > { %v807_v56 = vsel %vm314_vm8, %v794_v55, %v795_v54  ;;  %v1809_v55 = vand.u32 %v2906_v46, %v3946_v40 }
  0xdd   : > { %v808_v57 = vsel %vm801_vm15, %v777_v52, %v807_v56  ;;  %v767_v58 = vpop.permute.xlu1 %766  ;;  %v765_v59 = vpop.permute.xlu0 %764  ;;  %1828 = vmatpush1.bf16.msra.mxu0 %v2831_v53 }
  0xde   : > { %v789_v60 = vrot.slane %v767_v58, 4  ;;  %826 = vst.msk [vmem:[#allocation2 + $0x1b8] sm:$0xf] %vm242_vm7, %v767_v58  ;;  %v788_v61 = vrot.slane %v765_v59, 4  ;;  %v2883_v62 = vcombine.high %v806_v50, %v808_v57  ;;  %v2882_v63 = vcombine.low %v806_v50, %v808_v57  ;;  %1829 = vmatprep.subr.bf16.mxu0 %v2829_v32 }
  0xe0   : > { %v800_v4 = vsel %vm314_vm8, %v788_v61, %v789_v60  ;;  %1938 = vmatprep.subr.bf16.mxu1 %v2883_v62 }
  0xe1   : > { %v802_v5 = vsel %vm801_vm15, %v765_v59, %v800_v4  ;;  %v771_v2 = vpop.permute.xlu1 %770  ;;  %v769_v3 = vpop.permute.xlu0 %768  ;;  %1939 = vmatpush1.bf16.msra.mxu1 %v2882_v63  ;;  %1830 = vmatpush1.bf16.msra.mxu0 %v2828_v33 }
  0xe2   : > { %v791_v6 = vrot.slane %v771_v2, 4  ;;  %828 = vst.msk [vmem:[#allocation2 + $0x1c4] sm:$0xf] %vm242_vm7, %v771_v2  ;;  %v790_v1 = vrot.slane %v769_v3, 4  ;;  %1831 = vmatprep.subr.bf16.mxu0 %v2826_v37 }
  0xe4   : > { %v803_v32 = vsel %vm314_vm8, %v790_v1, %v791_v6 }
  0xe5   : > { %v804_v7 = vsel %vm801_vm15, %v769_v3, %v803_v32  ;;  %v686_v8 = vpop.permute.xlu1 %685  ;;  %v684_v10 = vpop.permute.xlu0 %683  ;;  %1832 = vmatpush1.bf16.msra.mxu0 %v2825_v39 }
  0xe6   : > { %v700_v30 = vrot.slane %v686_v8, 4  ;;  %737 = vst.msk [vmem:[#allocation2 + $0x1a0] sm:$0xf] %vm242_vm7, %v686_v8  ;;  %v699_v31 = vrot.slane %v684_v10, 4  ;;  %v2880_v33 = vcombine.high %v802_v5, %v804_v7  ;;  %v2879_v12 = vcombine.low %v802_v5, %v804_v7 }
  0xe8   : > { %v712_v37 = vsel %vm314_vm8, %v699_v31, %v700_v30  ;;  %1940 = vmatprep.subr.bf16.mxu1 %v2880_v33 }
  0xe9   : > { %v713_v0 = vsel %vm704_vm1, %v684_v10, %v712_v37  ;;  %v690_v15 = vpop.permute.xlu1 %689  ;;  %v688_v35 = vpop.permute.xlu0 %687  ;;  %1941 = vmatpush1.bf16.msra.mxu1 %v2879_v12 }
  0xea   : > { %v702_v36 = vrot.slane %v690_v15, 4  ;;  %739 = vst.msk [vmem:[#allocation2 + $0x1ac] sm:$0xf] %vm242_vm7, %v690_v15  ;;  %v701_v39 = vrot.slane %v688_v35, 4 }
  0xec   : > { %v714_v16 = vsel %vm314_vm8, %v701_v39, %v702_v36 }
  0xed   : > { %v715_v17 = vsel %vm704_vm1, %v688_v35, %v714_v16  ;;  %v678_v18 = vpop.permute.xlu1 %677  ;;  %v676_v19 = vpop.permute.xlu0 %675 }
  0xee   : > { %v696_v20 = vrot.slane %v678_v18, 4  ;;  %733 = vst.msk [vmem:[#allocation2 + $0x188] sm:$0xf] %vm242_vm7, %v678_v18  ;;  %v695_v21 = vrot.slane %v676_v19, 4  ;;  %v2877_v22 = vcombine.high %v713_v0, %v715_v17  ;;  %v2876_v23 = vcombine.low %v713_v0, %v715_v17 }
  0xf0   : > { %v708_v24 = vsel %vm314_vm8, %v695_v21, %v696_v20  ;;  %1942 = vmatprep.subr.bf16.mxu1 %v2877_v22 }
  0xf1   : > { %v709_v25 = vsel %vm704_vm1, %v676_v19, %v708_v24  ;;  %v682_v26 = vpop.permute.xlu1 %681  ;;  %v680_v27 = vpop.permute.xlu0 %679  ;;  %1943 = vmatpush1.bf16.msra.mxu1 %v2876_v23 }
  0xf2   : > { %v698_v29 = vrot.slane %v682_v26, 4  ;;  %735 = vst.msk [vmem:[#allocation2 + $0x194] sm:$0xf] %vm242_vm7, %v682_v26  ;;  %v697_v34 = vrot.slane %v680_v27, 4 }
  0xf4   : > { %v710_v41 = vsel %vm314_vm8, %v697_v34, %v698_v29 }
  0xf5   : > { %v711_v42 = vsel %vm704_vm1, %v680_v27, %v710_v41  ;;  %v670_v43 = vpop.permute.xlu1 %669  ;;  %v668_v44 = vpop.permute.xlu0 %667 }
  0xf6   : > { %v692_v47 = vrot.slane %v670_v43, 4  ;;  %729 = vst.msk [vmem:[#allocation2 + $0x170] sm:$0xf] %vm242_vm7, %v670_v43  ;;  %v691_v48 = vrot.slane %v668_v44, 4  ;;  %v2874_v49 = vcombine.high %v709_v25, %v711_v42  ;;  %v2873_v50 = vcombine.low %v709_v25, %v711_v42 }
  0xf8   : > { %v703_v51 = vsel %vm314_vm8, %v691_v48, %v692_v47  ;;  %1944 = vmatprep.subr.bf16.mxu1 %v2874_v49 }
  0xf9   : > { %v705_v52 = vsel %vm704_vm1, %v668_v44, %v703_v51  ;;  %v674_v53 = vpop.permute.xlu1 %673  ;;  %v672_v54 = vpop.permute.xlu0 %671  ;;  %1945 = vmatpush1.bf16.msra.mxu1 %v2873_v50 }
  0xfa   : > { %v694_v56 = vrot.slane %v674_v53, 4  ;;  %731 = vst.msk [vmem:[#allocation2 + $0x17c] sm:$0xf] %vm242_vm7, %v674_v53  ;;  %v693_v57 = vrot.slane %v672_v54, 4  ;;  %1954 = vmatprep.subr.bf16.mxu1 %v1812_v45 }
  0xfc   : > { %v706_v58 = vsel %vm314_vm8, %v693_v57, %v694_v56 }
  0xfd   : > { %v707_v59 = vsel %vm704_vm1, %v672_v54, %v706_v58  ;;  %v589_v60 = vpop.permute.xlu1 %588  ;;  %v587_v61 = vpop.permute.xlu0 %586  ;;  %1955 = vmatpush2.bf16.msra.mxu1 %v1809_v55 }
  0xfe   : > { %v603_v62 = vrot.slane %v589_v60, 4  ;;  %640 = vst.msk [vmem:[#allocation2 + $0x158] sm:$0xf] %vm242_vm7, %v589_v60  ;;  %v602_v63 = vrot.slane %v587_v61, 4  ;;  %v2871_v4 = vcombine.high %v705_v52, %v707_v59  ;;  %v2870_v5 = vcombine.low %v705_v52, %v707_v59 }
 0x100   : > { %v615_v2 = vsel %vm314_vm8, %v602_v63, %v603_v62  ;;  %1833 = vmatprep.subr.bf16.mxu0 %v2871_v4 }
 0x101   : > { %v616_v3 = vsel %vm607_vm0, %v587_v61, %v615_v2  ;;  %v593_v6 = vpop.permute.xlu1 %592  ;;  %v591_v1 = vpop.permute.xlu0 %590  ;;  %1834 = vmatpush2.bf16.msra.mxu0 %v2870_v5 }
 0x102   : > { %v605_v32 = vrot.slane %v593_v6, 4  ;;  %642 = vst.msk [vmem:[#allocation2 + $0x164] sm:$0xf] %vm242_vm7, %v593_v6  ;;  %v604_v7 = vrot.slane %v591_v1, 4 }
 0x104   : > { %v617_v8 = vsel %vm314_vm8, %v604_v7, %v605_v32 }
 0x105   : > { %v618_v10 = vsel %vm607_vm0, %v591_v1, %v617_v8  ;;  %v977_v30 = vpop.permute.xlu1 %976  ;;  %v975_v31 = vpop.permute.xlu0 %974 }
 0x106   : > { %v991_v33 = vrot.slane %v977_v30, 4  ;;  %1028 = vst.msk [vmem:[#allocation2 + $0x278] sm:$0xf] %vm242_vm7, %v977_v30  ;;  %v990_v12 = vrot.slane %v975_v31, 4  ;;  %v2868_v13 = vcombine.high %v616_v3, %v618_v10  ;;  %v2867_v14 = vcombine.low %v616_v3, %v618_v10 }
 0x108   : > { %v1003_v37 = vsel %vm314_vm8, %v990_v12, %v991_v33  ;;  %1835 = vmatprep.subr.bf16.mxu0 %v2868_v13 }
 0x109   : > { %v1004_v0 = vsel %vm995_vm2, %v975_v31, %v1003_v37  ;;  %v981_v15 = vpop.permute.xlu1 %980  ;;  %v979_v35 = vpop.permute.xlu0 %978  ;;  %1836 = vmatpush2.bf16.msra.mxu0 %v2867_v14 }
 0x10a   : > { %v993_v36 = vrot.slane %v981_v15, 4  ;;  %1030 = vst.msk [vmem:[#allocation2 + $0x284] sm:$0xf] %vm242_vm7, %v981_v15  ;;  %v992_v39 = vrot.slane %v979_v35, 4 }
 0x10c   : > { %v1005_v16 = vsel %vm314_vm8, %v992_v39, %v993_v36 }
 0x10d   : > { %v1006_v17 = vsel %vm995_vm2, %v979_v35, %v1005_v16  ;;  %v581_v18 = vpop.permute.xlu1 %580  ;;  %v579_v19 = vpop.permute.xlu0 %578 }
 0x10e   : > { %v599_v20 = vrot.slane %v581_v18, 4  ;;  %636 = vst.msk [vmem:[#allocation2 + $0x140] sm:$0xf] %vm242_vm7, %v581_v18  ;;  %v598_v21 = vrot.slane %v579_v19, 4  ;;  %v2904_v22 = vcombine.high %v1004_v0, %v1006_v17  ;;  %v2903_v23 = vcombine.low %v1004_v0, %v1006_v17 }
 0x110   : > { %v611_v9 = vsel %vm314_vm8, %v598_v21, %v599_v20  ;;  %1956 = vmatprep.subr.bf16.mxu1 %v2904_v22  ;;  %v3140_v20 = vld [vmem:[#allocation2 + $0x170] ss:$12 sps:$4 sm:$0xff]   ;;  %v3999_v21 = vld [vmem:[%s4605_s0 + $0x8] ss:$16 sps:$4 sm:$0xff]  }
 0x111   : > { %v612_v24 = vsel %vm607_vm0, %v579_v19, %v611_v9  ;;  %v585_v25 = vpop.permute.xlu1 %584  ;;  %v583_v26 = vpop.permute.xlu0 %582  ;;  %1957 = vmatpush2.bf16.msra.mxu1 %v2903_v23 }
 0x112   : > { %v601_v27 = vrot.slane %v585_v25, 4  ;;  %638 = vst.msk [vmem:[#allocation2 + $0x14c] sm:$0xf] %vm242_vm7, %v585_v25  ;;  %v600_v28 = vrot.slane %v583_v26, 4 }
 0x114   : > { %v613_v29 = vsel %vm314_vm8, %v600_v28, %v601_v27  ;;  %v3144_v27 = vld [vmem:[#allocation2 + $0xb0] ss:$12 sps:$4 sm:$0xff]  }
 0x115   : > { %v614_v34 = vsel %vm607_vm0, %v583_v26, %v613_v29  ;;  %v969_v41 = vpop.permute.xlu1 %968  ;;  %v967_v42 = vpop.permute.xlu0 %966  ;;  %v3145_v29 = vld [vmem:[#allocation2 + $0x158] ss:$12 sps:$4 sm:$0xff]  }
 0x116   : > { %v987_v43 = vrot.slane %v969_v41, 4  ;;  %1024 = vst.msk [vmem:[#allocation2 + $0x260] sm:$0xf] %vm242_vm7, %v969_v41  ;;  %v986_v44 = vrot.slane %v967_v42, 4  ;;  %v2865_v45 = vcombine.high %v612_v24, %v614_v34  ;;  %v2864_v46 = vcombine.low %v612_v24, %v614_v34  ;;  %v4005_v24 = vld [vmem:[%s4605_s0 + $0x2c] ss:$16 sps:$4 sm:$0xff]  }
 0x118   : > { %v999_v47 = vsel %vm314_vm8, %v986_v44, %v987_v43  ;;  %1837 = vmatprep.subr.bf16.mxu0 %v2865_v45 }
 0x119   : > { %v1000_v48 = vsel %vm995_vm2, %v967_v42, %v999_v47  ;;  %v973_v49 = vpop.permute.xlu1 %972  ;;  %v971_v50 = vpop.permute.xlu0 %970  ;;  %1838 = vmatpush2.bf16.msra.mxu0 %v2864_v46  ;;  %v3146_v47 = vld [vmem:[#allocation2 + $0x98] ss:$12 sps:$4 sm:$0xff]  }
 0x11a   : > { %v989_v51 = vrot.slane %v973_v49, 4  ;;  %1026 = vst.msk [vmem:[#allocation2 + $0x26c] sm:$0xf] %vm242_vm7, %v973_v49  ;;  %v988_v52 = vrot.slane %v971_v50, 4  ;;  %v3147_v49 = vld [vmem:[#allocation2 + $0x140] ss:$12 sps:$4 sm:$0xff]  }
 0x11c   : > { %v1001_v53 = vsel %vm314_vm8, %v988_v52, %v989_v51 }
 0x11d   : > { %v1002_v54 = vsel %vm995_vm2, %v971_v50, %v1001_v53  ;;  %v573_v55 = vpop.permute.xlu1 %572  ;;  %v571_v56 = vpop.permute.xlu0 %570  ;;  %v4018_v50 = vld [vmem:[%s4605_s0 + $0x28] ss:$16 sps:$4 sm:$0xff]  }
 0x11e   : > { %v595_v57 = vrot.slane %v573_v55, 4  ;;  %632 = vst.msk [vmem:[#allocation2 + $0x128] sm:$0xf] %vm242_vm7, %v573_v55  ;;  %v594_v58 = vrot.slane %v571_v56, 4  ;;  %v2901_v59 = vcombine.high %v1000_v48, %v1002_v54  ;;  %v2900_v60 = vcombine.low %v1000_v48, %v1002_v54  ;;  %v4024_v54 = vld [vmem:[%s4605_s0 + $0x4c] ss:$16 sps:$4 sm:$0xff]  }
 0x120   : > { %v606_v61 = vsel %vm314_vm8, %v594_v58, %v595_v57  ;;  %1958 = vmatprep.subr.bf16.mxu1 %v2901_v59  ;;  %v3151_v57 = vld [vmem:[#allocation2 + $0x80] ss:$12 sps:$4 sm:$0xff]  }
 0x121   : > { %v608_v62 = vsel %vm607_vm0, %v571_v56, %v606_v61  ;;  %v577_v63 = vpop.permute.xlu1 %576  ;;  %v575_v4 = vpop.permute.xlu0 %574  ;;  %1959 = vmatpush2.bf16.msra.mxu1 %v2900_v60 }
 0x122   : > { %v597_v5 = vrot.slane %v577_v63, 4  ;;  %634 = vst.msk [vmem:[#allocation2 + $0x134] sm:$0xf] %vm242_vm7, %v577_v63  ;;  %v596_v2 = vrot.slane %v575_v4, 4 }
 0x124   : > { %v609_v3 = vsel %vm314_vm8, %v596_v2, %v597_v5 }
 0x125   : > { %v610_v6 = vsel %vm607_vm0, %v575_v4, %v609_v3  ;;  %v961_v1 = vpop.permute.xlu1 %960  ;;  %v959_v32 = vpop.permute.xlu0 %958  ;;  %v3153_v3 = vld [vmem:[#allocation2 + $0x68] ss:$12 sps:$4 sm:$0xff]  }
 0x126   : > { %v983_v7 = vrot.slane %v961_v1, 4  ;;  %1020 = vst.msk [vmem:[#allocation2 + $0x248] sm:$0xf] %vm242_vm7, %v961_v1  ;;  %v982_v8 = vrot.slane %v959_v32, 4  ;;  %v2862_v10 = vcombine.high %v608_v62, %v610_v6  ;;  %v2861_v30 = vcombine.low %v608_v62, %v610_v6 }
 0x128   : > { %v994_v31 = vsel %vm314_vm8, %v982_v8, %v983_v7  ;;  %1839 = vmatprep.subr.bf16.mxu0 %v2862_v10 }
 0x129   : > { %v996_v33 = vsel %vm995_vm2, %v959_v32, %v994_v31  ;;  %v965_v12 = vpop.permute.xlu1 %964  ;;  %v963_v13 = vpop.permute.xlu0 %962  ;;  %1840 = vmatpush2.bf16.msra.mxu0 %v2861_v30  ;;  %v3152_v59 = vld [vmem:[#allocation2 + $0x128] ss:$12 sps:$4 sm:$0xff]   ;;  %v4043_v30 = vld [vmem:[%s4605_s0 + $0x6c] ss:$16 sps:$4 sm:$0xff]  }
 0x12a   : > { %v985_v14 = vrot.slane %v965_v12, 4  ;;  %1022 = vst.msk [vmem:[#allocation2 + $0x254] sm:$0xf] %vm242_vm7, %v965_v12  ;;  %v984_v37 = vrot.slane %v963_v13, 4  ;;  %v4037_v32 = vld [vmem:[%s4605_s0 + $0x48] ss:$16 sps:$4 sm:$0xff]  }
 0x12b   : > { %v3158_v12 = vld [vmem:[#allocation2 + $0x50] ss:$12 sps:$4 sm:$0xff]  }
 0x12c   : > { %v997_v0 = vsel %vm314_vm8, %v984_v37, %v985_v14 }
 0x12d   : > { %v998_v15 = vsel %vm995_vm2, %v963_v13, %v997_v0  ;;  %v492_v35 = vpop.permute.xlu1 %491  ;;  %v490_v36 = vpop.permute.xlu0 %489 }
 0x12e   : > { %v506_v39 = vrot.slane %v492_v35, 4  ;;  %543 = vst.msk [vmem:[#allocation2 + $0x110] sm:$0xf] %vm242_vm7, %v492_v35  ;;  %v505_v16 = vrot.slane %v490_v36, 4  ;;  %v2898_v17 = vcombine.high %v996_v33, %v998_v15  ;;  %v2897_v18 = vcombine.low %v996_v33, %v998_v15  ;;  %v3160_v35 = vld [vmem:[#allocation2 + $0x38] ss:$12 sps:$4 sm:$0xff]  }
 0x130   : > { %v518_v19 = vsel %vm314_vm8, %v505_v16, %v506_v39  ;;  %1960 = vmatprep.subr.bf16.mxu1 %v2898_v17 }
 0x131   : > { %v519_v22 = vsel %vm510_vm3, %v490_v36, %v518_v19  ;;  %v496_v23 = vpop.permute.xlu1 %495  ;;  %v494_v9 = vpop.permute.xlu0 %493  ;;  %1961 = vmatpush2.bf16.msra.mxu1 %v2897_v18  ;;  %v4056_v19 = vld [vmem:[%s4605_s0 + $0x68] ss:$16 sps:$4 sm:$0xff]  }
 0x132   : > { %v508_v25 = vrot.slane %v496_v23, 4  ;;  %545 = vst.msk [vmem:[#allocation2 + $0x11c] sm:$0xf] %vm242_vm7, %v496_v23  ;;  %v507_v26 = vrot.slane %v494_v9, 4  ;;  %2989 = vmatprep.subr.bf16.mxu1 %v3140_v20  ;;  %v4061_v20 = vld [vmem:[%s4605_s0 + $0x8c] ss:$16 sps:$4 sm:$0xff]  }
 0x134   : > { %v520_v28 = vsel %vm314_vm8, %v507_v26, %v508_v25  ;;  %1963 = vmatmul.mubr.bf16.vlgmr.msra.gmra.mxu1 %v3999_v21  ;;  %v3165_v26 = vld [vmem:[#allocation2 + $0x20] ss:$12 sps:$4 sm:$0xff]  }
 0x135   : > { %v521_v34 = vsel %vm510_vm3, %v494_v9, %v520_v28  ;;  %v484_v41 = vpop.permute.xlu1 %483  ;;  %v482_v42 = vpop.permute.xlu0 %481  ;;  %2990 = vmatpush3.bf16.msra.mxu1 %v3144_v27  ;;  %2910 = vmatprep.mubr.msk.bf16.mxu1 %vm1780_vm14, %v4005_v24 }
 0x136   : > { %v502_v43 = vrot.slane %v484_v41, 4  ;;  %539 = vst.msk [vmem:[#allocation2 + $0xf8] sm:$0xf] %vm242_vm7, %v484_v41  ;;  %v501_v44 = vrot.slane %v482_v42, 4  ;;  %2991 = vmatprep.subr.bf16.mxu1 %v3145_v29  ;;  %v2859_v45 = vcombine.high %v519_v22, %v521_v34  ;;  %v2858_v46 = vcombine.low %v519_v22, %v521_v34 }
 0x138   : > { %v514_v48 = vsel %vm314_vm8, %v501_v44, %v502_v43  ;;  %1841 = vmatprep.subr.bf16.mxu0 %v2859_v45  ;;  %v4073_v43 = vld [vmem:[%s4605_s0] ss:$16 sps:$4 sm:$0xff]   ;;  %v4078_v44 = vld [vmem:[%s4605_s0 + $0x88] ss:$16 sps:$4 sm:$0xff]  }
 0x139   : > { %v515_v51 = vsel %vm510_vm3, %v482_v42, %v514_v48  ;;  %v488_v52 = vpop.permute.xlu1 %487  ;;  %v486_v53 = vpop.permute.xlu0 %485  ;;  %2992 = vmatpush3.bf16.msra.mxu1 %v3146_v47  ;;  %1842 = vmatpush2.bf16.msra.mxu0 %v2858_v46  ;;  %v3154_v1 = vld [vmem:[#allocation2 + $0x110] ss:$12 sps:$4 sm:$0xff]   ;;  %v4083_v46 = vld [vmem:[%s4605_s0 + $0x24] ss:$16 sps:$4 sm:$0xff]  }
 0x13a   : > { %v504_v55 = vrot.slane %v488_v52, 4  ;;  %541 = vst.msk [vmem:[#allocation2 + $0x104] sm:$0xf] %vm242_vm7, %v488_v52  ;;  %v503_v56 = vrot.slane %v486_v53, 4  ;;  %2993 = vmatprep.subr.bf16.mxu1 %v3147_v49  ;;  %v4089_v47 = vld [vmem:[%s4605_s0 + $0xac] ss:$16 sps:$4 sm:$0xff]  }
 0x13b   : > { %v3173_v48 = vld [vmem:[#allocation2 + $0x230] ss:$12 sps:$4 sm:$0xff]   ;;  %v3198_v49 = vld [vmem:[#allocation2 + $0x8] ss:$12 sps:$4 sm:$0xff]  }
 0x13c   : > { %v516_v58 = vsel %vm314_vm8, %v503_v56, %v504_v55  ;;  %1973 = vmatmul.mubr.bf16.gmra.mxu1 %v4018_v50  ;;  %v4100_v52 = vld [vmem:[%s4605_s0 + $0x20] ss:$16 sps:$4 sm:$0xff]   ;;  %v4111_v55 = vld [vmem:[%s4605_s0 + $0x44] ss:$16 sps:$4 sm:$0xff]   ;;  %v4117_v56 = vld [vmem:[%s4605_s0 + $0xcc] ss:$16 sps:$4 sm:$0xff]  }
 0x13d   : > { %v517_v60 = vsel %vm510_vm3, %v486_v53, %v516_v58  ;;  %v476_v61 = vpop.permute.xlu1 %475  ;;  %v474_v62 = vpop.permute.xlu0 %473  ;;  %2994 = vmatpush3.bf16.msra.mxu1 %v3151_v57  ;;  %2911 = vmatprep.mubr.msk.bf16.mxu1 %vm1780_vm14, %v4024_v54  ;;  %v4105_v53 = vld [vmem:[%s4605_s0 + $0xa8] ss:$16 sps:$4 sm:$0xff]   ;;  %v3181_v57 = vld [vmem:[#allocation2 + $0x200] ss:$12 sps:$4 sm:$0xff]  }
 0x13e   : > { %v498_v63 = vrot.slane %v476_v61, 4  ;;  %535 = vst.msk [vmem:[#allocation2 + $0xe0] sm:$0xf] %vm242_vm7, %v476_v61  ;;  %v497_v4 = vrot.slane %v474_v62, 4  ;;  %2995 = vmatprep.subr.bf16.mxu1 %v3152_v59  ;;  %v2856_v5 = vcombine.high %v515_v51, %v517_v60  ;;  %v2855_v2 = vcombine.low %v515_v51, %v517_v60  ;;  %v3174_v51 = vld [vmem:[#allocation2 + $0x218] ss:$12 sps:$4 sm:$0xff]  }
 0x13f   : > { %v3182_v58 = vld [vmem:[#allocation2 + $0x1e8] ss:$12 sps:$4 sm:$0xff]   ;;  %v4128_v59 = vld [vmem:[%s4605_s0 + $0x40] ss:$16 sps:$4 sm:$0xff]  }
 0x140   : > { %v509_v6 = vsel %vm314_vm8, %v497_v4, %v498_v63  ;;  %1843 = vmatprep.subr.bf16.mxu0 %v2856_v5  ;;  %v4133_v60 = vld [vmem:[%s4605_s0 + $0xc8] ss:$16 sps:$4 sm:$0xff]   ;;  %v4138_v61 = vld [vmem:[%s4605_s0 + $0x64] ss:$16 sps:$4 sm:$0xff]   ;;  %v3189_v63 = vld [vmem:[#allocation2 + $0x1d0] ss:$12 sps:$4 sm:$0xff]  }
 0x141   : > { %v511_v7 = vsel %vm510_vm3, %v474_v62, %v509_v6  ;;  %v480_v8 = vpop.permute.xlu1 %479  ;;  %v478_v10 = vpop.permute.xlu0 %477  ;;  %2996 = vmatpush3.bf16.msra.mxu1 %v3153_v3  ;;  %1844 = vmatpush2.bf16.msra.mxu0 %v2855_v2  ;;  %v3159_v14 = vld [vmem:[#allocation2 + $0xf8] ss:$12 sps:$4 sm:$0xff]   ;;  %v4144_v62 = vld [vmem:[%s4605_s0 + $0xec] ss:$16 sps:$4 sm:$0xff]   ;;  %v3195_v5 = vld [vmem:[%s4605_s0 + $0x60] ss:$16 sps:$4 sm:$0xff]  }
 0x142   : > { %v500_v31 = vrot.slane %v480_v8, 4  ;;  %537 = vst.msk [vmem:[#allocation2 + $0xec] sm:$0xf] %vm242_vm7, %v480_v8  ;;  %v499_v33 = vrot.slane %v478_v10, 4  ;;  %2997 = vmatprep.subr.bf16.mxu1 %v3154_v1  ;;  %v3190_v4 = vld [vmem:[#allocation2 + $0x1b8] ss:$12 sps:$4 sm:$0xff]  }
 0x143   : > { %v4158_v2 = vld [vmem:[%s4605_s0 + $0xe8] ss:$16 sps:$4 sm:$0xff]   ;;  %v3200_v3 = vld [vmem:[%s4605_s0 + $0x84] ss:$16 sps:$4 sm:$0xff]   ;;  %v3197_v6 = vld [vmem:[#allocation2 + $0x1a0] ss:$12 sps:$4 sm:$0xff]  }
 0x144   : > { %v512_v13 = vsel %vm314_vm8, %v499_v33, %v500_v31  ;;  %1983 = vmatmul.mubr.bf16.gmra.mxu1 %v4037_v32  ;;  %v3203_v1 = vld [vmem:[#allocation2 + $0x290] ss:$0 sps:$4 sm:$0x11]   ;;  %v3205_v31 = vld [vmem:[%s4605_s0 + $0xa4] ss:$16 sps:$4 sm:$0xff]  }
 0x145   : > { %v513_v37 = vsel %vm510_vm3, %v478_v10, %v512_v13  ;;  %v395_v0 = vpop.permute.xlu1 %394  ;;  %v393_v15 = vpop.permute.xlu0 %392  ;;  %2998 = vmatpush3.bf16.msra.mxu1 %v3158_v12  ;;  %2912 = vmatprep.mubr.msk.bf16.mxu1 %vm1780_vm14, %v4043_v30  ;;  %v3202_v8 = vld [vmem:[%s4605_s0 + $0x80] ss:$16 sps:$4 sm:$0xff]   ;;  %v1815_v10 = vand.u32 %v3203_v1, %v3946_v40  ;;  %v3210_v12 = vld [vmem:[%s4605_s0 + $0xc4] ss:$16 sps:$4 sm:$0xff]  }
 0x146   : > { %v409_v36 = vrot.slane %v395_v0, 4  ;;  %446 = vst.msk [vmem:[#allocation2 + $0xc8] sm:$0xf] %vm242_vm7, %v395_v0  ;;  %v408_v39 = vrot.slane %v393_v15, 4  ;;  %2999 = vmatprep.subr.bf16.mxu1 %v3159_v14  ;;  %v2853_v16 = vcombine.high %v511_v7, %v513_v37  ;;  %v2852_v17 = vcombine.low %v511_v7, %v513_v37  ;;  %v3199_v7 = vld [vmem:[#allocation2 + $0x188] ss:$12 sps:$4 sm:$0xff]  }
 0x147   : > { %v3207_v40 = vld [vmem:[%s4605_s0 + $0xa0] ss:$16 sps:$4 sm:$0xff]   ;;  %v3209_v13 = vld [vmem:[#allocation2 + $0x248] ss:$12 sps:$4 sm:$0xff]  }
 0x148   : > { %v421_v18 = vsel %vm314_vm8, %v408_v39, %v409_v36  ;;  %1845 = vmatprep.subr.bf16.mxu0 %v2853_v16  ;;  %v3208_v33 = vld [vmem:[#allocation2 + $0x260] ss:$12 sps:$4 sm:$0xff]   ;;  %v3213_v37 = vld [vmem:[%s4605_s0 + $0xe4] ss:$16 sps:$4 sm:$0xff]  }
 0x149   : > { %v422_v22 = vsel %vm413_vm9, %v393_v15, %v421_v18  ;;  %v399_v23 = vpop.permute.xlu1 %398  ;;  %v397_v9 = vpop.permute.xlu0 %396  ;;  %1846 = vmatpush2.bf16.msra.mxu0 %v2852_v17  ;;  %3000 = vmatpush3.bf16.msra.mxu1 %v3160_v35  ;;  %v3161_v25 = vld [vmem:[#allocation2 + $0xe0] ss:$12 sps:$4 sm:$0xff]  }
 0x14a   : > { %v411_v27 = vrot.slane %v399_v23, 4  ;;  %448 = vst.msk [vmem:[#allocation2 + $0xd4] sm:$0xf] %vm242_vm7, %v399_v23  ;;  %v410_v28 = vrot.slane %v397_v9, 4  ;;  %3001 = vmatprep.subr.bf16.mxu1 %v3161_v25  ;;  %v3212_v14 = vld [vmem:[%s4605_s0 + $0xc0] ss:$16 sps:$4 sm:$0xff]  }
 0x14b   : > { %v3215_v0 = vld [vmem:[%s4605_s0 + $0xe0] ss:$16 sps:$4 sm:$0xff]   ;;  %v3432_v15 = vld [vmem:[%s4605_s0 + $0xc] ss:$16 sps:$4 sm:$0xff]  }
 0x14c   : > { %v423_v29 = vsel %vm314_vm8, %v410_v28, %v411_v27  ;;  %1993 = vmatmul.mubr.bf16.gmra.mxu1 %v4056_v19 }
 0x14d   : > { %v424_v34 = vsel %vm413_vm9, %v397_v9, %v423_v29  ;;  %3002 = vmatpush3.bf16.msra.mxu1 %v3165_v26  ;;  %2913 = vmatprep.mubr.msk.bf16.mxu1 %vm1780_vm14, %v4061_v20 }
 0x14e   : > { %v2850_v41 = vcombine.high %v422_v22, %v424_v34  ;;  %v2849_v42 = vcombine.low %v422_v22, %v424_v34 }
 0x150   : > { %1847 = vmatprep.subr.bf16.mxu0 %v2850_v41 }
 0x151   : > { %v3166_v45 = vld [vmem:[#allocation2 + $0xc8] ss:$12 sps:$4 sm:$0xff]   ;;  %1848 = vmatpush2.bf16.msra.mxu0 %v2849_v42 }
 0x152   : > { %2140 = vmatprep.subr.bf16.mxu0 %v3533_v11  ;;  %3003 = vmatprep.subr.bf16.mxu1 %v3166_v45 }
 0x153   : > { %3004 = vmatpush3.bf16.msra.mxu1 %v3198_v49 }
 0x154   : > { %1850 = vmatmul.mubr.bf16.vlgmr.msra.gmra.mxu0 %v4073_v43  ;;  %2003 = vmatmul.mubr.bf16.gmra.mxu1 %v4078_v44 }
 0x155   : > { %2141 = vmatpush1.bf16.msra.mxu0 %v3173_v48  ;;  %1859 = vmatprep.mubr.bf16.mxu0 %v4083_v46 }
 0x156   : > { %2142 = vmatprep.subr.bf16.mxu0 %v3533_v11  ;;  %2914 = vmatprep.mubr.msk.bf16.mxu1 %vm1780_vm14, %v4089_v47 }
 0x157   : > { %3053 = vmatprep.subr.bf16.mxu1 %v3533_v11 }
 0x159   : > { %2143 = vmatpush1.bf16.msra.mxu0 %v3174_v51 }
 0x15a   : > { %2144 = vmatprep.subr.bf16.mxu0 %v3533_v11 }
 0x15c   : > { %1860 = vmatmul.mubr.bf16.gmra.mxu0 %v4100_v52  ;;  %2013 = vmatmul.mubr.bf16.gmra.mxu1 %v4105_v53 }
 0x15d   : > { %2145 = vmatpush1.bf16.msra.mxu0 %v3181_v57  ;;  %1869 = vmatprep.mubr.bf16.mxu0 %v4111_v55 }
 0x15e   : > { %2146 = vmatprep.subr.bf16.mxu0 %v3533_v11  ;;  %2915 = vmatprep.mubr.msk.bf16.mxu1 %vm1780_vm14, %v4117_v56 }
 0x161   : > { %2147 = vmatpush1.bf16.msra.mxu0 %v3182_v58 }
 0x162   : > { %2148 = vmatprep.subr.bf16.mxu0 %v3533_v11 }
 0x164   : > { %1870 = vmatmul.mubr.bf16.gmra.mxu0 %v4128_v59  ;;  %2023 = vmatmul.mubr.bf16.gmra.mxu1 %v4133_v60 }
 0x165   : > { %2149 = vmatpush1.bf16.msra.mxu0 %v3189_v63  ;;  %1879 = vmatprep.mubr.bf16.mxu0 %v4138_v61 }
 0x166   : > { %2150 = vmatprep.subr.bf16.mxu0 %v3533_v11  ;;  %2916 = vmatprep.mubr.msk.bf16.mxu1 %vm1780_vm14, %v4144_v62 }
 0x169   : > { %2151 = vmatpush1.bf16.msra.mxu0 %v3190_v4 }
 0x16a   : > { %2152 = vmatprep.subr.bf16.mxu0 %v3533_v11 }
 0x16c   : > { %1880 = vmatmul.mubr.bf16.gmra.mxu0 %v3195_v5  ;;  %2033 = vmatmul.mubr.bf16.gmra.mxu1 %v4158_v2 }
 0x16d   : > { %2153 = vmatpush1.bf16.msra.mxu0 %v3197_v6  ;;  %1889 = vmatprep.mubr.bf16.mxu0 %v3200_v3 }
 0x16e   : > { %2154 = vmatprep.subr.bf16.mxu0 %v3533_v11  ;;  %2075 = vmatprep.mubr.bf16.mxu1 %v3890_v38  ;;  %v3204_v38 = vld [vmem:[#allocation2 + $0x278] ss:$12 sps:$4 sm:$0xff]  }
 0x171   : > { %2155 = vmatpush1.bf16.msra.mxu0 %v3199_v7 }
 0x172   : > { %2164 = vmatprep.subr.bf16.mxu0 %v3533_v11 }
 0x174   : > { %1890 = vmatmul.mubr.bf16.gmra.mxu0 %v3202_v8  ;;  %2076 = vmatmul.mubr.bf16.vlgmr.msra.gmra.mxu1 %v4073_v43 }
 0x175   : > { %3065 = vmatpush1.bf16.msra.mxu1 %v3173_v48  ;;  %2165 = vmatpush2.bf16.msra.mxu0 %v1815_v10 }
 0x176   : > { %3054 = vmatprep.subr.bf16.mxu1 %v3533_v11  ;;  %2166 = vmatprep.subr.bf16.mxu0 %v3533_v11 }
 0x177   : > { %1899 = vmatprep.mubr.bf16.mxu0 %v3205_v31  ;;  %2083 = vmatprep.mubr.bf16.mxu1 %v4083_v46 }
 0x179   : > { %3066 = vmatpush1.bf16.msra.mxu1 %v3174_v51  ;;  %2167 = vmatpush2.bf16.msra.mxu0 %v3204_v38 }
 0x17a   : > { %3055 = vmatprep.subr.bf16.mxu1 %v3533_v11  ;;  %2168 = vmatprep.subr.bf16.mxu0 %v3533_v11 }
 0x17c   : > { %1900 = vmatmul.mubr.bf16.gmra.mxu0 %v3207_v40  ;;  %2084 = vmatmul.mubr.bf16.gmra.mxu1 %v4100_v52 }
 0x17d   : > { %3067 = vmatpush1.bf16.msra.mxu1 %v3181_v57  ;;  %2169 = vmatpush2.bf16.msra.mxu0 %v3208_v33 }
 0x17e   : > { %3056 = vmatprep.subr.bf16.mxu1 %v3533_v11  ;;  %2170 = vmatprep.subr.bf16.mxu0 %v3533_v11 }
 0x17f   : > { %1909 = vmatprep.mubr.bf16.mxu0 %v3210_v12  ;;  %2091 = vmatprep.mubr.bf16.mxu1 %v4111_v55 }
 0x181   : > { %3068 = vmatpush1.bf16.msra.mxu1 %v3182_v58  ;;  %2171 = vmatpush2.bf16.msra.mxu0 %v3209_v13 }
 0x182   : > { %3057 = vmatprep.subr.bf16.mxu1 %v3533_v11 }
 0x184   : > { %1910 = vmatmul.mubr.bf16.gmra.mxu0 %v3212_v14  ;;  %2092 = vmatmul.mubr.bf16.gmra.mxu1 %v4128_v59 }
 0x185   : > { %3069 = vmatpush1.bf16.msra.mxu1 %v3189_v63  ;;  %1919 = vmatprep.mubr.bf16.mxu0 %v3213_v37 }
 0x186   : > { %3058 = vmatprep.subr.bf16.mxu1 %v3533_v11  ;;  %2099 = vmatprep.mubr.bf16.mxu1 %v4138_v61 }
 0x189   : > { %3070 = vmatpush1.bf16.msra.mxu1 %v3190_v4 }
 0x18a   : > { %3059 = vmatprep.subr.bf16.mxu1 %v3533_v11 }
 0x18c   : > { %1920 = vmatmul.mubr.bf16.gmra.mxu0 %v3215_v0  ;;  %2100 = vmatmul.mubr.bf16.gmra.mxu1 %v3195_v5 }
 0x18d   : > { %3071 = vmatpush1.bf16.msra.mxu1 %v3197_v6  ;;  %2107 = vmatprep.mubr.bf16.mxu1 %v3200_v3 }
 0x18e   : > { %3060 = vmatprep.subr.bf16.mxu1 %v3533_v11  ;;  %2917 = vmatprep.mubr.msk.bf16.mxu0 %vm1780_vm14, %v3432_v15 }
 0x191   : > { %3072 = vmatpush1.bf16.msra.mxu1 %v3199_v7 }
 0x192   : > { %3061 = vmatprep.subr.bf16.mxu1 %v3533_v11 }
 0x194   : > { %2108 = vmatmul.mubr.bf16.gmra.mxu1 %v3202_v8  ;;  %2173 = vmatmul.mubr.bf16.vlgmr.msra.gmra.mxu0 %v3999_v21 }
 0x195   : > { %3073 = vmatpush2.bf16.msra.mxu1 %v1815_v10  ;;  %2115 = vmatprep.mubr.bf16.mxu1 %v3205_v31 }
 0x196   : > { %3062 = vmatprep.subr.bf16.mxu1 %v3533_v11  ;;  %2918 = vmatprep.mubr.msk.bf16.mxu0 %vm1780_vm14, %v4005_v24 }
 0x199   : > { %3074 = vmatpush2.bf16.msra.mxu1 %v3204_v38 }
 0x19a   : > { %3063 = vmatprep.subr.bf16.mxu1 %v3533_v11 }
 0x19c   : > { %2116 = vmatmul.mubr.bf16.gmra.mxu1 %v3207_v40  ;;  %2181 = vmatmul.mubr.bf16.gmra.mxu0 %v4018_v50 }
 0x19d   : > { %3075 = vmatpush2.bf16.msra.mxu1 %v3208_v33  ;;  %2123 = vmatprep.mubr.bf16.mxu1 %v3210_v12 }
 0x19e   : > { %3064 = vmatprep.subr.bf16.mxu1 %v3533_v11  ;;  %2919 = vmatprep.mubr.msk.bf16.mxu0 %vm1780_vm14, %v4024_v54 }
 0x1a1   : > { %3076 = vmatpush2.bf16.msra.mxu1 %v3209_v13 }
 0x1a4   : > { %2124 = vmatmul.mubr.bf16.gmra.mxu1 %v3212_v14  ;;  %2189 = vmatmul.mubr.bf16.gmra.mxu0 %v4037_v32 }
 0x1a5   : > { %2131 = vmatprep.mubr.bf16.mxu1 %v3213_v37  ;;  %2920 = vmatprep.mubr.msk.bf16.mxu0 %vm1780_vm14, %v4043_v30 }
 0x1ac   : > { %2132 = vmatmul.mubr.bf16.gmra.mxu1 %v3215_v0  ;;  %2197 = vmatmul.mubr.bf16.gmra.mxu0 %v4056_v19 }
 0x1ad   : > { %2921 = vmatprep.mubr.msk.bf16.mxu0 %vm1780_vm14, %v4061_v20  ;;  %2924 = vmatprep.mubr.msk.bf16.mxu1 %vm1780_vm14, %v4144_v62 }
 0x1b4   : > { %2205 = vmatmul.mubr.bf16.gmra.mxu0 %v4078_v44  ;;  %2229 = vmatmul.mubr.bf16.vlgmr.msra.gmra.mxu1 %v4158_v2 }
 0x1b5   : > { %2922 = vmatprep.mubr.msk.bf16.mxu0 %vm1780_vm14, %v4089_v47 }
 0x1bc   : > { %2213 = vmatmul.mubr.bf16.gmra.mxu0 %v4105_v53 }
 0x1bd   : > { %2923 = vmatprep.mubr.msk.bf16.mxu0 %vm1780_vm14, %v4117_v56 }
 0x1c4   : > { %2221 = vmatmul.mubr.bf16.gmra.mxu0 %v4133_v60 }
 0x1f4   : > { %v1964_v11 = vpop.f32.mrf.mxu1 }
 0x1f6   : > { %v1966_v21 = vpop.f32.mrf.mxu1 }
 0x1f8   : > { %v1968_v24 = vpop.f32.mrf.mxu1 }
 0x1fa   : > { %v1970_v50 = vpop.f32.mrf.mxu1 }
 0x1fc   : > { %v1974_v54 = vpop.f32.mrf.mxu1 }
 0x1fe   : > { %v1976_v32 = vpop.f32.mrf.mxu1 }
 0x200   : > { %v1978_v30 = vpop.f32.mrf.mxu1 }
 0x202   : > { %v1980_v35 = vpop.f32.mrf.mxu1 }
 0x204   : > { %v1984_v36 = vpop.f32.mrf.mxu1 }
 0x206   : > { %v1986_v39 = vpop.f32.mrf.mxu1 }
 0x208   : > { %v4236_v16 = vpop.f32.mrf.mxu1 }
 0x20a   : > { %v4238_v17 = vpop.f32.mrf.mxu1 }
 0x20c   : > { %v4240_v18 = vpop.f32.mrf.mxu1 }
 0x20e   : > { %v4242_v19 = vpop.f32.mrf.mxu1 }
 0x210   : > { %v4244_v20 = vpop.f32.mrf.mxu1 }
 0x212   : > { %v4246_v22 = vpop.f32.mrf.mxu1 }
 0x214   : > { %v1851_v23 = vpop.f32.mrf.mxu0  ;;  %v4248_v9 = vpop.f32.mrf.mxu1 }
 0x215   : > { %v1965_v43 = vadd.f32 %v1964_v11, %v1851_v23 }
 0x216   : > { %v1853_v25 = vpop.f32.mrf.mxu0  ;;  %v4250_v26 = vpop.f32.mrf.mxu1 }
 0x217   : > { %v1967_v46 = vadd.f32 %v1966_v21, %v1853_v25  ;;  %v2925_v51 = vmul.f32 -1.442695, %v1965_v43 }
 0x218   : > { %v1855_v27 = vpop.f32.mrf.mxu0  ;;  %v4252_v28 = vpop.f32.mrf.mxu1 }
 0x219   : > { %v1969_v49 = vadd.f32 %v1968_v24, %v1855_v27  ;;  %v2926_v56 = vmul.f32 -1.442695, %v1967_v46  ;;  %3216 = vpow2.f32 %v2925_v51 }
 0x21a   : > { %v1857_v29 = vpop.f32.mrf.mxu0  ;;  %v4254_v34 = vpop.f32.mrf.mxu1 }
 0x21b   : > { %v1971_v52 = vadd.f32 %v1970_v50, %v1857_v29  ;;  %v2928_v60 = vmul.f32 -1.442695, %v1969_v49  ;;  %3218 = vpow2.f32 %v2926_v56 }
 0x21c   : > { %v1861_v41 = vpop.f32.mrf.mxu0  ;;  %v4256_v42 = vpop.f32.mrf.mxu1 }
 0x21d   : > { %v1975_v57 = vadd.f32 %v1974_v54, %v1861_v41  ;;  %v2929_v61 = vmul.f32 -1.442695, %v1971_v52  ;;  %3220 = vpow2.f32 %v2928_v60 }
 0x21e   : > { %v1863_v44 = vpop.f32.mrf.mxu0  ;;  %v4258_v45 = vpop.f32.mrf.mxu1 }
 0x21f   : > { %v1977_v62 = vadd.f32 %v1976_v32, %v1863_v44  ;;  %v2931_v5 = vmul.f32 -1.442695, %v1975_v57  ;;  %3222 = vpow2.f32 %v2929_v61 }
 0x220   : > { %v1865_v47 = vpop.f32.mrf.mxu0  ;;  %v4260_v48 = vpop.f32.mrf.mxu1 }
 0x221   : > { %v2932_v6 = vmul.f32 -1.442695, %v1977_v62  ;;  %3224 = vpow2.f32 %v2931_v5  ;;  %v1979_v13 = vadd.f32 %v1978_v30, %v1865_v47 }
 0x222   : > { %v1867_v53 = vpop.f32.mrf.mxu0  ;;  %v4262_v55 = vpop.f32.mrf.mxu1 }
 0x223   : > { %3226 = vpow2.f32 %v2932_v6  ;;  %v1981_v0 = vadd.f32 %v1980_v35, %v1867_v53  ;;  %v2934_v54 = vmul.f32 -1.442695, %v1979_v13 }
 0x224   : > { %v1871_v58 = vpop.f32.mrf.mxu0  ;;  %v4264_v59 = vpop.f32.mrf.mxu1 }
 0x225   : > { %v1985_v8 = vadd.f32 %v1984_v36, %v1871_v58  ;;  %v2935_v25 = vmul.f32 -1.442695, %v1981_v0 }
 0x226   : > { %v1873_v63 = vpop.f32.mrf.mxu0  ;;  %v4266_v4 = vpop.f32.mrf.mxu1 }
 0x227   : > { %v2937_v33 = vmul.f32 -1.442695, %v1985_v8  ;;  %v1987_v12 = vadd.f32 %v1986_v39, %v1873_v63  ;;  %v3217_v21 = vpop.eup %3216 }
 0x228   : > { %v1875_v2 = vpop.f32.mrf.mxu0  ;;  %v4268_v3 = vpop.f32.mrf.mxu1  ;;  %v2273_v39 = vadd.f32 1.0, %v3217_v21 }
 0x229   : > { %3228 = vpow2.f32 %v2937_v33  ;;  %v2938_v24 = vmul.f32 -1.442695, %v1987_v12  ;;  %v1989_v50 = vadd.f32 %v4236_v16, %v1875_v2  ;;  %v3219_v23 = vpop.eup %3218 }
 0x22a   : > { %v1877_v1 = vpop.f32.mrf.mxu0  ;;  %v4270_v7 = vpop.f32.mrf.mxu1  ;;  %v2274_v46 = vadd.f32 1.0, %v3219_v23 }
 0x22b   : > { %v3221_v27 = vpop.eup %3220  ;;  %3230 = vpow2.f32 %v2938_v24  ;;  %v2940_v35 = vmul.f32 -1.442695, %v1989_v50  ;;  %v1991_v43 = vadd.f32 %v4238_v17, %v1877_v1 }
 0x22c   : > { %v1881_v10 = vpop.f32.mrf.mxu0  ;;  %v4272_v31 = vpop.f32.mrf.mxu1  ;;  %3232 = vpow2.f32 %v2934_v54  ;;  %v2276_v51 = vadd.f32 1.0, %v3221_v27 }
 0x22d   : > { %v3223_v41 = vpop.eup %3222  ;;  %3234 = vpow2.f32 %v2935_v25  ;;  %v1995_v52 = vadd.f32 %v4240_v18, %v1881_v10  ;;  %v2941_v60 = vmul.f32 -1.442695, %v1991_v43 }
 0x22e   : > { %v1883_v38 = vpop.f32.mrf.mxu0  ;;  %v4274_v40 = vpop.f32.mrf.mxu1  ;;  %3236 = vrcp.f32 %v2273_v39  ;;  %v2277_v53 = vadd.f32 1.0, %v3223_v41 }
 0x22f   : > { %v3225_v49 = vpop.eup %3224  ;;  %3238 = vpow2.f32 %v2940_v35  ;;  %v1997_v17 = vadd.f32 %v4242_v19, %v1883_v38  ;;  %v2943_v18 = vmul.f32 -1.442695, %v1995_v52 }
 0x230   : > { %v1885_v14 = vpop.f32.mrf.mxu0  ;;  %v4276_v37 = vpop.f32.mrf.mxu1  ;;  %3240 = vrcp.f32 %v2274_v46  ;;  %v2279_v62 = vadd.f32 1.0, %v3225_v49 }
 0x231   : > { %v3227_v58 = vpop.eup %3226  ;;  %v1999_v63 = vadd.f32 %v4244_v20, %v1885_v14  ;;  %3242 = vrcp.f32 %v2276_v51  ;;  %v2944_v38 = vmul.f32 -1.442695, %v1997_v17 }
 0x232   : > { %v1887_v15 = vpop.f32.mrf.mxu0  ;;  %v4278_v11 = vpop.f32.mrf.mxu1  ;;  %3244 = vrcp.f32 %v2277_v53  ;;  %v2280_v1 = vadd.f32 1.0, %v3227_v58 }
 0x233   : > { %v2001_v6 = vadd.f32 %v4246_v22, %v1887_v15  ;;  %3246 = vpow2.f32 %v2941_v60  ;;  %v2946_v20 = vmul.f32 -1.442695, %v1999_v63 }
 0x234   : > { %v1891_v32 = vpop.f32.mrf.mxu0  ;;  %v3005_v36 = vpop.f32.mrf.mxu1  ;;  %3248 = vrcp.f32 %v2279_v62 }
 0x235   : > { %v2005_v8 = vadd.f32 %v4248_v9, %v1891_v32  ;;  %3250 = vpow2.f32 %v2943_v18  ;;  %v2947_v22 = vmul.f32 -1.442695, %v2001_v6 }
 0x236   : > { %v1893_v30 = vpop.f32.mrf.mxu0  ;;  %v3006_v29 = vpop.f32.mrf.mxu1  ;;  %3252 = vrcp.f32 %v2280_v1 }
 0x237   : > { %v4282_v44 = vadd.f32 %v3006_v29, %v3005_v36  ;;  %v3229_v33 = vpop.eup %3228  ;;  %v2007_v12 = vadd.f32 %v4250_v26, %v1893_v30  ;;  %v2949_v0 = vmul.f32 -1.442695, %v2005_v8  ;;  %3254 = vpow2.f32 %v2944_v38 }
 0x238   : > { %v1895_v47 = vpop.f32.mrf.mxu0  ;;  %v3008_v16 = vpop.f32.mrf.mxu1  ;;  %v2345_v21 = vadd.f32 1.0, %v3229_v33  ;;  %3256 = vpow2.f32 %v2946_v20 }
 0x239   : > { %v3231_v24 = vpop.eup %3230  ;;  %v2950_v50 = vmul.f32 -1.442695, %v2007_v12  ;;  %3258 = vpow2.f32 %v2947_v22  ;;  %v2009_v36 = vadd.f32 %v4252_v28, %v1895_v47 }
 0x23a   : > { %v1897_v56 = vpop.f32.mrf.mxu0  ;;  %v3009_v57 = vpop.f32.mrf.mxu1  ;;  %3260 = vpow2.f32 %v2949_v0  ;;  %v2346_v29 = vadd.f32 1.0, %v3231_v24 }
 0x23b   : > { %v4286_v61 = vadd.f32 %v3009_v57, %v3008_v16  ;;  %v4308_v26 = vpop.eup %3232  ;;  %3262 = vrcp.f32 %v2345_v21  ;;  %v2011_v49 = vadd.f32 %v4254_v34, %v1897_v56 }
 0x23c   : > { %v4289_v5 = vpop.f32.mrf.mxu0  ;;  %v4291_v2 = vpop.f32.mrf.mxu1  ;;  %3264 = vpow2.f32 %v2950_v50 }
 0x23d   : > { %v4312_v25 = vpop.eup %3234  ;;  %v2953_v6 = vmul.f32 -1.442695, %v2011_v49  ;;  %v2015_v12 = vadd.f32 %v4256_v42, %v4289_v5 }
 0x23e   : > { %v4295_v10 = vpop.f32.mrf.mxu0  ;;  %v4297_v19 = vpop.f32.mrf.mxu1 }
 0x23f   : > { %v4314_v30 = vpop.eup %3236  ;;  %v2017_v5 = vadd.f32 %v4258_v45, %v4295_v10 }
 0x240   : > { %v4300_v13 = vpop.f32.mrf.mxu0  ;;  %v4302_v14 = vpop.f32.mrf.mxu1 }
 0x241   : > { %v3239_v43 = vpop.eup %3238  ;;  %v2956_v45 = vmul.f32 -1.442695, %v2017_v5  ;;  %v2282_v5 = vadd.f32 1.0, %v4308_v26 }
 0x242   : > { %v4304_v9 = vpop.f32.mrf.mxu0  ;;  %v4306_v15 = vpop.f32.mrf.mxu1  ;;  %v2348_v60 = vadd.f32 1.0, %v3239_v43 }
 0x243   : > { %v4319_v47 = vpop.eup %3240 }
 0x244   : > { %v1911_v54 = vpop.f32.mrf.mxu0  ;;  %v3017_v32 = vpop.f32.mrf.mxu1 }
 0x245   : > { %v2025_v23 = vadd.f32 %v4264_v59, %v1911_v54  ;;  %v2952_v59 = vmul.f32 -1.442695, %v2009_v36  ;;  %v4323_v53 = vpop.eup %3242 }
 0x246   : > { %v1913_v27 = vpop.f32.mrf.mxu0  ;;  %v3018_v39 = vpop.f32.mrf.mxu1 }
 0x247   : > { %v2961_v41 = vmul.f32 -1.442695, %v2025_v23  ;;  %v2027_v35 = vadd.f32 %v4266_v4, %v1913_v27  ;;  %v4317_v46 = vadd.f32 %v3018_v39, %v3017_v32  ;;  %v4325_v4 = vpop.eup %3244 }
 0x248   : > { %v1915_v16 = vpop.f32.mrf.mxu0  ;;  %v3020_v28 = vpop.f32.mrf.mxu1 }
 0x249   : > { %v2962_v51 = vmul.f32 -1.442695, %v2027_v35  ;;  %v2029_v52 = vadd.f32 %v4268_v3, %v1915_v16  ;;  %3266 = vpow2.f32 %v2961_v41  ;;  %v3247_v63 = vpop.eup %3246 }
 0x24a   : > { %v1917_v57 = vpop.f32.mrf.mxu0  ;;  %v3021_v58 = vpop.f32.mrf.mxu1  ;;  %3268 = vrcp.f32 %v2346_v29  ;;  %v2349_v54 = vadd.f32 1.0, %v3247_v63 }
 0x24b   : > { %v2964_v17 = vmul.f32 -1.442695, %v2029_v52  ;;  %v2031_v62 = vadd.f32 %v4270_v7, %v1917_v57  ;;  %3270 = vpow2.f32 %v2962_v51  ;;  %v4328_v18 = vadd.f32 %v3021_v58, %v3020_v28  ;;  %v4332_v3 = vpop.eup %3248 }
 0x24c   : > { %v1921_v34 = vpop.f32.mrf.mxu0  ;;  %v4330_v56 = vpop.f32.mrf.mxu1  ;;  %3272 = vpow2.f32 %v2952_v59 }
 0x24d   : > { %v2965_v1 = vmul.f32 -1.442695, %v2031_v62  ;;  %v2035_v8 = vadd.f32 %v4272_v31, %v1921_v34  ;;  %v3251_v38 = vpop.eup %3250  ;;  %3274 = vpow2.f32 %v2964_v17 }
 0x24e   : > { %v1923_v33 = vpop.f32.mrf.mxu0  ;;  %v4335_v20 = vpop.f32.mrf.mxu1  ;;  %3276 = vrcp.f32 %v2348_v60  ;;  %v2351_v28 = vadd.f32 1.0, %v3251_v38 }
 0x24f   : > { %v4337_v7 = vpop.eup %3252  ;;  %v2967_v22 = vmul.f32 -1.442695, %v2035_v8  ;;  %v2037_v0 = vadd.f32 %v4274_v40, %v1923_v33  ;;  %3278 = vpow2.f32 %v2965_v1  ;;  %v2955_v40 = vmul.f32 -1.442695, %v2015_v12 }
 0x250   : > { %v3255_v21 = vpop.eup %3254  ;;  %v1925_v24 = vpop.f32.mrf.mxu0  ;;  %3280 = vpow2.f32 %v2953_v6 }
 0x251   : > { %v4342_v50 = vpop.f32.mrf.mxu1  ;;  %v3257_v31 = vpop.eup %3256  ;;  %v2968_v32 = vmul.f32 -1.442695, %v2037_v0  ;;  %v2039_v36 = vadd.f32 %v4276_v37, %v1925_v24  ;;  %3282 = vpow2.f32 %v2967_v22  ;;  %v2352_v63 = vadd.f32 1.0, %v3255_v21 }
 0x252   : > { %v4345_v23 = vpop.eup %3258  ;;  %v1927_v27 = vpop.f32.mrf.mxu0  ;;  %v2354_v24 = vadd.f32 1.0, %v3257_v31 }
 0x253   : > { %v4347_v39 = vpop.f32.mrf.mxu1  ;;  %v4349_v42 = vpop.eup %3260  ;;  %v2970_v29 = vmul.f32 -1.442695, %v2039_v36  ;;  %v2041_v41 = vadd.f32 %v4278_v11, %v1927_v27  ;;  %3284 = vpow2.f32 %v2968_v32  ;;  %v2019_v11 = vadd.f32 %v4260_v48, %v4300_v13 }
 0x254   : > { %v4354_v35 = vpop.eup %3262  ;;  %v4356_v37 = vpop.f32.mrf.mxu0  ;;  %3286 = vrcp.f32 %v2349_v54 }
 0x255   : > { %v3029_v43 = vpop.f32.mrf.mxu1  ;;  %v4358_v16 = vpop.eup %3264  ;;  %v2971_v59 = vmul.f32 -1.442695, %v2041_v41  ;;  %3288 = vpow2.f32 %v2970_v29  ;;  %v2958_v48 = vmul.f32 -1.442695, %v2019_v11  ;;  %v2021_v29 = vadd.f32 %v4262_v55, %v4304_v9 }
 0x256   : > { %v2176_v51 = vpop.f32.mrf.mxu0  ;;  %v3267_v52 = vpop.eup %3266  ;;  %3290 = vpow2.f32 %v2955_v40 }
 0x257   : > { %v3030_v49 = vpop.f32.mrf.mxu1  ;;  %v4364_v57 = vpop.eup %3268  ;;  %v2489_v58 = vadd.f32 1.0, %v3267_v52  ;;  %3292 = vpow2.f32 %v2971_v59  ;;  %v2283_v59 = vadd.f32 1.0, %v4312_v25  ;;  %v2959_v9 = vmul.f32 -1.442695, %v2021_v29 }
 0x258   : > { %v4362_v10 = vadd.f32 %v3030_v49, %v3029_v43  ;;  %v4366_v17 = vpop.f32.mrf.mxu0  ;;  %v3271_v62 = vpop.eup %3270  ;;  %3294 = vrcp.f32 %v2351_v28 }
 0x259   : > { %v3032_v60 = vpop.f32.mrf.mxu1  ;;  %v3273_v34 = vpop.eup %3272  ;;  %3296 = vrcp.f32 %v2489_v58  ;;  %v2490_v6 = vadd.f32 1.0, %v3271_v62  ;;  %v2355_v62 = vadd.f32 1.0, %v4345_v23 }
 0x25a   : > { %v2179_v8 = vpop.f32.mrf.mxu0  ;;  %v3275_v38 = vpop.eup %3274  ;;  %3298 = vpow2.f32 %v2956_v45 }
 0x25b   : > { %v3033_v1 = vpop.f32.mrf.mxu1  ;;  %v4370_v33 = vpop.eup %3276  ;;  %3300 = vrcp.f32 %v2490_v6  ;;  %v2492_v12 = vadd.f32 1.0, %v3275_v38  ;;  %v2417_v6 = vadd.f32 1.0, %v4349_v42 }
 0x25c   : > { %v4368_v13 = vadd.f32 %v3033_v1, %v3032_v60  ;;  %v4374_v0 = vpop.f32.mrf.mxu0  ;;  %v3279_v21 = vpop.eup %3278  ;;  %3302 = vrcp.f32 %v2352_v63 }
 0x25d   : > { %v4372_v22 = vpop.f32.mrf.mxu1  ;;  %v3281_v54 = vpop.eup %3280  ;;  %3304 = vrcp.f32 %v2492_v12  ;;  %v2493_v32 = vadd.f32 1.0, %v3279_v21  ;;  %v2418_v12 = vadd.f32 1.0, %v4358_v16  ;;  %v2549_v21 = vld [vmem:[%s4394_s28] sm:$0xff]  ;;  %v3013_v16 = vadd.f32 %v4297_v19, %v4291_v2 }
 0x25e   : > { %v2184_v27 = vpop.f32.mrf.mxu0  ;;  %v3283_v40 = vpop.eup %3282  ;;  %3306 = vpow2.f32 %v2958_v48 }
 0x25f   : > { %v4376_v36 = vpop.f32.mrf.mxu1  ;;  %3308 = vrcp.f32 %v2493_v32  ;;  %v2495_v41 = vadd.f32 1.0, %v3283_v40  ;;  %v2420_v32 = vadd.f32 1.0, %v3273_v34  ;;  %v2550_v27 = vld [vmem:[%s4394_s28 + $0x8] sm:$0xff]  ;;  %v2552_v40 = vld [vmem:[%s4394_s28 + $0x18] sm:$0xff] }
 0x260   : > { %v4384_v28 = vpop.f32.mrf.mxu0  ;;  %v3285_v31 = vpop.eup %3284  ;;  %3310 = vrcp.f32 %v2354_v24  ;;  %v2562_v19 = vmul.f32 %v4364_v57, %v2550_v27 }
 0x261   : > { %v4382_v43 = vpop.f32.mrf.mxu1  ;;  %v4387_v49 = vpop.eup %3286  ;;  %3312 = vrcp.f32 %v2495_v41  ;;  %v2496_v51 = vadd.f32 1.0, %v3285_v31  ;;  %v2421_v41 = vadd.f32 1.0, %v3281_v54  ;;  %v4419_v31 = vadd.f32 %v4306_v15, %v4302_v14 }
 0x262   : > { %v2187_v52 = vpop.f32.mrf.mxu0  ;;  %v3289_v55 = vpop.eup %3288  ;;  %3314 = vrcp.f32 %v2282_v5  ;;  %v2564_v14 = vmul.f32 %v4370_v33, %v2552_v40  ;;  %v2558_v40 = vld [vmem:[%s4394_s28 + $0x48] sm:$0xff] }
 0x263   : > { %v4389_v26 = vpop.f32.mrf.mxu1  ;;  %v3291_v45 = vpop.eup %3290  ;;  %3316 = vrcp.f32 %v2496_v51  ;;  %v2498_v25 = vadd.f32 1.0, %v3289_v55  ;;  %v2561_v51 = vmul.f32 %v4354_v35, %v2549_v21  ;;  %v2553_v55 = vld [vmem:[%s4394_s28 + $0x20] sm:$0xff] }
 0x264   : > { %v4398_v58 = vpop.f32.mrf.mxu0  ;;  %v3293_v60 = vpop.eup %3292  ;;  %3318 = vrcp.f32 %v2283_v59  ;;  %v2423_v2 = vadd.f32 1.0, %v3291_v45 }
 0x265   : > { %v4396_v11 = vpop.f32.mrf.mxu1  ;;  %v3295_v63 = vpop.eup %3294  ;;  %3320 = vrcp.f32 %v2498_v25  ;;  %v2499_v1 = vadd.f32 1.0, %v3293_v60 }
 0x266   : > { %v2192_v38 = vpop.f32.mrf.mxu0  ;;  %v3297_v48 = vpop.eup %3296  ;;  %3322 = vpow2.f32 %v2959_v9  ;;  %v2555_v9 = vld [vmem:[%s4394_s28 + $0x30] sm:$0xff] }
 0x267   : > { %v4405_v8 = vpop.f32.mrf.mxu1  ;;  %v3299_v24 = vpop.eup %3298  ;;  %v2525_v23 = vmul.f32 2.0, %v3297_v48  ;;  %3324 = vrcp.f32 %v2499_v1  ;;  %v2556_v1 = vld [vmem:[%s4394_s28 + $0x38] sm:$0xff]  ;;  %v4432_v45 = vmul.f32 %v3295_v63, %v2555_v9 }
 0x268   : > { %v4413_v5 = vpop.f32.mrf.mxu0  ;;  %v3301_v29 = vpop.eup %3300  ;;  %3326 = vrcp.f32 %v2355_v62 }
 0x269   : > { %v4411_v42 = vpop.f32.mrf.mxu1  ;;  %v3303_v34 = vpop.eup %3302  ;;  %3328 = vrcp.f32 %v2417_v6  ;;  %v2973_v59 = vadd.f32 -1.0, %v2525_v23  ;;  %v2526_v52 = vmul.f32 2.0, %v3301_v29  ;;  %v2424_v23 = vadd.f32 1.0, %v3299_v24 }
 0x26a   : > { %v2195_v54 = vpop.f32.mrf.mxu0  ;;  %v3305_v60 = vpop.eup %3304  ;;  %3330 = vrcp.f32 %v2418_v12  ;;  %v2565_v12 = vmul.f32 %v4387_v49, %v2553_v55  ;;  %v3025_v24 = vadd.f32 %v4335_v20, %v4330_v56  ;;  %v2183_v49 = vadd.f32 %v3013_v16, %v4374_v0 }
 0x26b   : > { %v4425_v25 = vpop.f32.mrf.mxu1  ;;  %v3307_v15 = vpop.eup %3306  ;;  %3332 = vrcp.f32 %v2420_v32  ;;  %v2573_v62 = vmul.f32 %v4314_v30, %v2973_v59  ;;  %v2974_v35 = vadd.f32 -1.0, %v2526_v52  ;;  %v2528_v6 = vmul.f32 2.0, %v3305_v60 }
 0x26c   : > { %v2198_v48 = vpop.f32.mrf.mxu0  ;;  %v3309_v21 = vpop.eup %3308  ;;  %3334 = vrcp.f32 %v2421_v41  ;;  %v2568_v54 = vmul.f32 %v3303_v34, %v2556_v1  ;;  %v2426_v60 = vadd.f32 1.0, %v3307_v15  ;;  %v2933_v1 = vmul.f32 -1.442695, %v2183_v49 }
 0x26d   : > { %v3047_v38 = vpop.f32.mrf.mxu1  ;;  %v3311_v57 = vpop.eup %3310  ;;  %v2585_v33 = vadd.f32 %v2573_v62, %v2561_v51  ;;  %v2574_v32 = vmul.f32 %v4319_v47, %v2974_v35  ;;  %v2976_v27 = vadd.f32 -1.0, %v2528_v6  ;;  %v2529_v30 = vmul.f32 2.0, %v3309_v21 }
 0x26e   : > { %v2200_v59 = vpop.f32.mrf.mxu0  ;;  %v3313_v52 = vpop.eup %3312  ;;  %3336 = vrcp.f32 %v2423_v2  ;;  %v2570_v20 = vmul.f32 %v3311_v57, %v2558_v40  ;;  %v2199_v21 = vadd.f32 %v3025_v24, %v2198_v48  ;;  %v3028_v40 = vadd.f32 %v4347_v39, %v4342_v50 }
 0x26f   : > { %v3048_v29 = vpop.f32.mrf.mxu1  ;;  %v3315_v63 = vpop.eup %3314  ;;  %3338 = vtanh.f32 %v2585_v33  ;;  %2634 = vst [vmem:[%s4441_s5] sm:$0xff] %v2585_v33  ;;  %v2586_v47 = vadd.f32 %v2574_v32, %v2562_v19  ;;  %v2576_v41 = vmul.f32 %v4323_v53, %v2976_v27  ;;  %v2977_v51 = vadd.f32 -1.0, %v2529_v30 }
 0x270   : > { %v2201_v9 = vpop.f32.mrf.mxu0  ;;  %v3317_v34 = vpop.eup %3316  ;;  %3340 = vrcp.f32 %v2424_v23  ;;  %v2531_v56 = vmul.f32 2.0, %v3313_v52  ;;  %v3049_v33 = vadd.f32 %v3048_v29, %v3047_v38  ;;  %v2559_v52 = vld [vmem:[%s4394_s28 + $0x50] sm:$0xff] }
 0x271   : > { %v3050_v55 = vpop.f32.mrf.mxu1  ;;  %v3319_v0 = vpop.eup %3318  ;;  %3342 = vtanh.f32 %v2586_v47  ;;  %2635 = vst [vmem:[%s4441_s5 + $0x8] sm:$0xff] %v2586_v47  ;;  %v2588_v16 = vadd.f32 %v2576_v41, %v2564_v14  ;;  %v2577_v2 = vmul.f32 %v4325_v4, %v2977_v51  ;;  %v2532_v62 = vmul.f32 2.0, %v3317_v34 }
 0x272   : > { %v2203_v19 = vpop.f32.mrf.mxu0  ;;  %v3321_v6 = vpop.eup %3320  ;;  %v2979_v53 = vadd.f32 -1.0, %v2531_v56  ;;  %v2202_v51 = vadd.f32 %v3028_v40, %v2201_v9 }
 0x273   : > { %v3051_v35 = vpop.f32.mrf.mxu1  ;;  %v3323_v23 = vpop.eup %3322  ;;  %3344 = vtanh.f32 %v2588_v16  ;;  %2637 = vst [vmem:[%s4441_s5 + $0x18] sm:$0xff] %v2588_v16  ;;  %v2589_v15 = vadd.f32 %v2577_v2, %v2565_v12  ;;  %v2980_v57 = vadd.f32 -1.0, %v2532_v62  ;;  %v2534_v32 = vmul.f32 2.0, %v3321_v6 }
 0x274   : > { %v4448_v27 = vpop.f32.mrf.mxu0  ;;  %v3325_v4 = vpop.eup %3324  ;;  %3346 = vrcp.f32 %v2426_v60  ;;  %v2579_v30 = vmul.f32 %v4332_v3, %v2979_v53  ;;  %v3052_v48 = vadd.f32 %v3051_v35, %v3050_v55  ;;  %v2945_v3 = vmul.f32 -1.442695, %v2199_v21 }
 0x275   : > { %v2230_v14 = vpop.f32.mrf.mxu1  ;;  %v3327_v38 = vpop.eup %3326  ;;  %3348 = vtanh.f32 %v2589_v15  ;;  %2638 = vst [vmem:[%s4441_s5 + $0x20] sm:$0xff] %v2589_v15  ;;  %v2580_v29 = vmul.f32 %v4337_v7, %v2980_v57  ;;  %v2982_v12 = vadd.f32 -1.0, %v2534_v32  ;;  %v2535_v59 = vmul.f32 2.0, %v3325_v4 }
 0x276   : > { %v2208_v24 = vpop.f32.mrf.mxu0  ;;  %v3329_v47 = vpop.eup %3328  ;;  %v2591_v41 = vadd.f32 %v2579_v30, %v4432_v45  ;;  %3350 = vpow2.f32 %v2933_v1  ;;  %v2231_v60 = vadd.f32 %v3049_v33, %v2230_v14  ;;  %v2427_v2 = vadd.f32 1.0, %v3323_v23 }
 0x277   : > { %v2232_v49 = vpop.f32.mrf.mxu1  ;;  %v3331_v50 = vpop.eup %3330  ;;  %v2592_v39 = vadd.f32 %v2580_v29, %v2568_v54  ;;  %v2582_v55 = vmul.f32 %v3315_v63, %v2982_v12  ;;  %v2983_v34 = vadd.f32 -1.0, %v2535_v59  ;;  %v2571_v62 = vmul.f32 %v3327_v38, %v2559_v52 }
 0x278   : > { %v4457_v56 = vpop.f32.mrf.mxu0  ;;  %v3333_v16 = vpop.eup %3332  ;;  %3352 = vtanh.f32 %v2591_v41  ;;  %2640 = vst [vmem:[%s4441_s5 + $0x30] sm:$0xff] %v2591_v41  ;;  %v2186_v45 = vadd.f32 %v4419_v31, %v4384_v28  ;;  %v2948_v53 = vmul.f32 -1.442695, %v2202_v51  ;;  %v2969_v33 = vmul.f32 -1.442695, %v2231_v60 }
 0x279   : > { %v2233_v7 = vpop.f32.mrf.mxu1  ;;  %v3335_v35 = vpop.eup %3334  ;;  %3354 = vtanh.f32 %v2592_v39  ;;  %2641 = vst [vmem:[%s4441_s5 + $0x38] sm:$0xff] %v2592_v39  ;;  %v2594_v9 = vadd.f32 %v2582_v55, %v2570_v20  ;;  %v2583_v54 = vmul.f32 %v3319_v0, %v2983_v34  ;;  %v2191_v14 = vadd.f32 %v4317_v46, %v4398_v58 }
 0x27a   : > { %v2234_v63 = vadd.f32 %v3052_v48, %v2233_v7  ;;  %v2211_v19 = vpop.f32.mrf.mxu0  ;;  %3356 = vpow2.f32 %v2945_v3  ;;  %v2936_v28 = vmul.f32 -1.442695, %v2186_v45  ;;  %v2175_v30 = vadd.f32 %v4282_v44, %v4356_v37 }
 0x27b   : > { %v2235_v6 = vpop.f32.mrf.mxu1  ;;  %v3337_v1 = vpop.eup %3336  ;;  %3358 = vtanh.f32 %v2594_v9  ;;  %2643 = vst [vmem:[%s4441_s5 + $0x48] sm:$0xff] %v2594_v9  ;;  %v2595_v21 = vadd.f32 %v2583_v54, %v2571_v62  ;;  %v2178_v58 = vadd.f32 %v4286_v61, %v4366_v17  ;;  %v2939_v59 = vmul.f32 -1.442695, %v2191_v14 }
 0x27c   : > { %v2214_v23 = vpop.f32.mrf.mxu0  ;;  %v3339_v15 = vpop.eup %3338  ;;  %3360 = vrcp.f32 %v2427_v2  ;;  %v2972_v20 = vmul.f32 -1.442695, %v2234_v63  ;;  %v3043_v52 = vadd.f32 %v4405_v8, %v4396_v11  ;;  %v2927_v37 = vmul.f32 -1.442695, %v2175_v30 }
 0x27d   : > { %v3341_v31 = vpop.eup %3340  ;;  %v2609_v57 = vmul.f32 %v3339_v15, %v3329_v47  ;;  %3362 = vtanh.f32 %v2595_v21  ;;  %2644 = vst [vmem:[%s4441_s5 + $0x50] sm:$0xff] %v2595_v21  ;;  %v2194_v49 = vadd.f32 %v4328_v18, %v4413_v5  ;;  %v2930_v61 = vmul.f32 -1.442695, %v2178_v58 }
 0x27e   : > { %v2216_v0 = vpop.f32.mrf.mxu0  ;;  %v3343_v32 = vpop.eup %3342  ;;  %3364 = vpow2.f32 %v2948_v53  ;;  %v3037_v17 = vadd.f32 %v4376_v36, %v4372_v22  ;;  %v3046_v11 = vadd.f32 %v4425_v25, %v4411_v42  ;;  %v3040_v5 = vadd.f32 %v4389_v26, %v4382_v43 }
 0x27f   : > { %2621 = vst [vmem:[%s4469_s6] sm:$0xff] %v2609_v57  ;;  %v2610_v4 = vmul.f32 %v3343_v32, %v3331_v50  ;;  %3366 = vpow2.f32 %v2969_v33  ;;  %v2942_v34 = vmul.f32 -1.442695, %v2194_v49  ;;  %v2207_v15 = vadd.f32 %v4362_v10, %v4448_v27 }
 0x280   : > { %v2217_v40 = vpop.f32.mrf.mxu0  ;;  %v3345_v48 = vpop.eup %3344  ;;  %3368 = vpow2.f32 %v2936_v28  ;;  %v2215_v36 = vadd.f32 %v3037_v17, %v2214_v23  ;;  %v2210_v32 = vadd.f32 %v4368_v13, %v4457_v56 }
 0x281   : > { %v3347_v38 = vpop.eup %3346  ;;  %2622 = vst [vmem:[%s4469_s6 + $0x8] sm:$0xff] %v2610_v4  ;;  %v2612_v46 = vmul.f32 %v3345_v48, %v3333_v16  ;;  %3370 = vpow2.f32 %v2972_v20  ;;  %v2951_v20 = vmul.f32 -1.442695, %v2207_v15 }
 0x282   : > { %v2219_v29 = vpop.f32.mrf.mxu0  ;;  %v3349_v12 = vpop.eup %3348  ;;  %3372 = vpow2.f32 %v2939_v59  ;;  %v2957_v63 = vmul.f32 -1.442695, %v2215_v36  ;;  %v2954_v27 = vmul.f32 -1.442695, %v2210_v32 }
 0x283   : > { %v3351_v24 = vpop.eup %3350  ;;  %2625 = vst [vmem:[%s4469_s6 + $0x18] sm:$0xff] %v2612_v46  ;;  %v2613_v44 = vmul.f32 %v3349_v12, %v3335_v35  ;;  %3374 = vpow2.f32 %v2927_v37  ;;  %v2218_v35 = vadd.f32 %v3040_v5, %v2217_v40 }
 0x284   : > { %v2222_v47 = vpop.f32.mrf.mxu0  ;;  %v2281_v22 = vadd.f32 1.0, %v3351_v24 }
 0x285   : > { %v2223_v41 = vadd.f32 %v3043_v52, %v2222_v47  ;;  %v3353_v3 = vpop.eup %3352  ;;  %2626 = vst [vmem:[%s4469_s6 + $0x20] sm:$0xff] %v2613_v44  ;;  %v2557_v52 = vld [vmem:[%s4394_s28 + $0x40] sm:$0xff]  ;;  %v2560_v47 = vld [vmem:[%s4394_s28 + $0x58] sm:$0xff] }
 0x286   : > { %v2224_v51 = vpop.f32.mrf.mxu0  ;;  %v3355_v50 = vpop.eup %3354  ;;  %v2615_v39 = vmul.f32 %v3353_v3, %v3337_v1  ;;  %v2960_v1 = vmul.f32 -1.442695, %v2218_v35 }
 0x287   : > { %v2963_v8 = vmul.f32 -1.442695, %v2223_v41  ;;  %v3357_v55 = vpop.eup %3356  ;;  %v2616_v18 = vmul.f32 %v3355_v50, %v3341_v31 }
 0x288   : > { %v2225_v60 = vpop.f32.mrf.mxu0  ;;  %v3359_v7 = vpop.eup %3358  ;;  %2628 = vst [vmem:[%s4469_s6 + $0x30] sm:$0xff] %v2615_v39  ;;  %v2353_v45 = vadd.f32 1.0, %v3357_v55 }
 0x289   : > { %3376 = vpow2.f32 %v2963_v8  ;;  %v2226_v16 = vadd.f32 %v3046_v11, %v2225_v60  ;;  %v3361_v2 = vpop.eup %3360  ;;  %2629 = vst [vmem:[%s4469_s6 + $0x38] sm:$0xff] %v2616_v18  ;;  %v2618_v42 = vmul.f32 %v3359_v7, %v3347_v38  ;;  %v2551_v7 = vld [vmem:[%s4394_s28 + $0x10] sm:$0xff] }
 0x28a   : > { %v2227_v25 = vpop.f32.mrf.mxu0  ;;  %v3363_v62 = vpop.eup %3362  ;;  %3378 = vpow2.f32 %v2930_v61 }
 0x28b   : > { %v2966_v9 = vmul.f32 -1.442695, %v2226_v16  ;;  %v3365_v43 = vpop.eup %3364  ;;  %2631 = vst [vmem:[%s4469_s6 + $0x48] sm:$0xff] %v2618_v42  ;;  %v2619_v26 = vmul.f32 %v3363_v62, %v3361_v2  ;;  %3380 = vpow2.f32 %v2942_v34 }
 0x28c   : > { %v3367_v54 = vpop.eup %3366  ;;  %3382 = vrcp.f32 %v2281_v22  ;;  %v2356_v21 = vadd.f32 1.0, %v3365_v43  ;;  %v2554_v43 = vld [vmem:[%s4394_s28 + $0x28] sm:$0xff] }
 0x28d   : > { %v3369_v19 = vpop.eup %3368  ;;  %2632 = vst [vmem:[%s4469_s6 + $0x50] sm:$0xff] %v2619_v26  ;;  %v2497_v6 = vadd.f32 1.0, %v3367_v54  ;;  %3384 = vpow2.f32 %v2966_v9 }
 0x28e   : > { %v3371_v53 = vpop.eup %3370  ;;  %3386 = vrcp.f32 %v2353_v45  ;;  %v2284_v23 = vadd.f32 1.0, %v3369_v19 }
 0x28f   : > { %3388 = vrcp.f32 %v2497_v6  ;;  %v2500_v33 = vadd.f32 1.0, %v3371_v53  ;;  %v3373_v28 = vpop.eup %3372 }
 0x290   : > { %3390 = vpow2.f32 %v2957_v63  ;;  %v3375_v31 = vpop.eup %3374  ;;  %v2347_v0 = vadd.f32 1.0, %v3373_v28 }
 0x291   : > { %3392 = vrcp.f32 %v2500_v33  ;;  %v2275_v40 = vadd.f32 1.0, %v3375_v31 }
 0x292   : > { %3394 = vpow2.f32 %v2960_v1 }
 0x293   : > { %3396 = vrcp.f32 %v2356_v21 }
 0x294   : > { %3398 = vrcp.f32 %v2284_v23 }
 0x296   : > { %v3377_v57 = vpop.eup %3376 }
 0x297   : > { %v2491_v14 = vadd.f32 1.0, %v3377_v57  ;;  %v3379_v4 = vpop.eup %3378 }
 0x298   : > { %v3381_v30 = vpop.eup %3380  ;;  %v2278_v59 = vadd.f32 1.0, %v3379_v4 }
 0x299   : > { %3400 = vrcp.f32 %v2491_v14  ;;  %v3383_v48 = vpop.eup %3382  ;;  %v2350_v46 = vadd.f32 1.0, %v3381_v30 }
 0x29a   : > { %3402 = vpow2.f32 %v2951_v20  ;;  %v3385_v10 = vpop.eup %3384 }
 0x29b   : > { %3404 = vrcp.f32 %v2347_v0  ;;  %v3387_v38 = vpop.eup %3386  ;;  %v2494_v58 = vadd.f32 1.0, %v3385_v10 }
 0x29c   : > { %v3389_v29 = vpop.eup %3388  ;;  %3406 = vrcp.f32 %v2275_v40  ;;  %v2569_v3 = vmul.f32 %v3387_v38, %v2557_v52 }
 0x29d   : > { %v3391_v12 = vpop.eup %3390  ;;  %v2533_v13 = vmul.f32 2.0, %v3389_v29  ;;  %3408 = vrcp.f32 %v2494_v58 }
 0x29e   : > { %v3393_v56 = vpop.eup %3392  ;;  %3410 = vpow2.f32 %v2954_v27  ;;  %v2425_v41 = vadd.f32 1.0, %v3391_v12 }
 0x29f   : > { %v3395_v24 = vpop.eup %3394  ;;  %3412 = vrcp.f32 %v2350_v46  ;;  %v2981_v44 = vadd.f32 -1.0, %v2533_v13  ;;  %v2536_v37 = vmul.f32 2.0, %v3393_v56 }
 0x2a0   : > { %v3397_v49 = vpop.eup %3396  ;;  %3414 = vrcp.f32 %v2278_v59  ;;  %v2428_v50 = vadd.f32 1.0, %v3395_v24 }
 0x2a1   : > { %v2581_v61 = vmul.f32 %v3383_v48, %v2981_v44  ;;  %v2984_v17 = vadd.f32 -1.0, %v2536_v37  ;;  %v3399_v51 = vpop.eup %3398  ;;  %v2572_v11 = vmul.f32 %v3397_v49, %v2560_v47  ;;  %3416 = vrcp.f32 %v2425_v41 }
 0x2a3   : > { %v2593_v39 = vadd.f32 %v2581_v61, %v2569_v3  ;;  %v2584_v8 = vmul.f32 %v3399_v51, %v2984_v17 }
 0x2a5   : > { %3418 = vtanh.f32 %v2593_v39  ;;  %2642 = vst.msk [vmem:[%s4441_s5 + $0x40] sm:$0xff] %vm2623_vm4, %v2593_v39  ;;  %v2596_v18 = vadd.f32 %v2584_v8, %v2572_v11 }
 0x2a6   : > { %v3401_v55 = vpop.eup %3400  ;;  %3420 = vrcp.f32 %v2428_v50 }
 0x2a7   : > { %v3403_v5 = vpop.eup %3402  ;;  %v2527_v34 = vmul.f32 2.0, %v3401_v55  ;;  %3422 = vtanh.f32 %v2596_v18  ;;  %2645 = vst.msk [vmem:[%s4441_s5 + $0x58] sm:$0xff] %vm2623_vm4, %v2596_v18 }
 0x2a8   : > { %v3405_v60 = vpop.eup %3404  ;;  %v2419_v16 = vadd.f32 1.0, %v3403_v5 }
 0x2a9   : > { %v2975_v22 = vadd.f32 -1.0, %v2527_v34  ;;  %v3407_v36 = vpop.eup %3406  ;;  %v2563_v42 = vmul.f32 %v3405_v60, %v2551_v7 }
 0x2aa   : > { %v3409_v2 = vpop.eup %3408  ;;  %3424 = vrcp.f32 %v2419_v16 }
 0x2ab   : > { %v2575_v25 = vmul.f32 %v3407_v36, %v2975_v22  ;;  %v3411_v62 = vpop.eup %3410  ;;  %v2530_v45 = vmul.f32 2.0, %v3409_v2 }
 0x2ac   : > { %v3413_v35 = vpop.eup %3412  ;;  %v2422_v63 = vadd.f32 1.0, %v3411_v62 }
 0x2ad   : > { %v2587_v9 = vadd.f32 %v2575_v25, %v2563_v42  ;;  %v2978_v26 = vadd.f32 -1.0, %v2530_v45  ;;  %v3415_v54 = vpop.eup %3414  ;;  %v2566_v19 = vmul.f32 %v3413_v35, %v2554_v43 }
 0x2ae   : > { %v3417_v53 = vpop.eup %3416 }
 0x2af   : > { %3426 = vtanh.f32 %v2587_v9  ;;  %2636 = vst.msk [vmem:[%s4441_s5 + $0x10] sm:$0xff] %vm2623_vm4, %v2587_v9  ;;  %v2578_v6 = vmul.f32 %v3415_v54, %v2978_v26 }
 0x2b0   : > { %3428 = vrcp.f32 %v2422_v63 }
 0x2b1   : > { %v2590_v1 = vadd.f32 %v2578_v6, %v2566_v19 }
 0x2b2   : > { %v3419_v21 = vpop.eup %3418 }
 0x2b3   : > { %v3421_v33 = vpop.eup %3420  ;;  %v2617_v23 = vmul.f32 %v3419_v21, %v3417_v53  ;;  %3430 = vtanh.f32 %v2590_v1  ;;  %2639 = vst.msk [vmem:[%s4441_s5 + $0x28] sm:$0xff] %vm2623_vm4, %v2590_v1 }
 0x2b4   : > { %v3423_v15 = vpop.eup %3422 }
 0x2b5   : > { %3446 = shalt.err (!%p3443_p3)
}
 0x2b6   : > { %s3447_s27 = scalar_lea.hbm %s4514_s11, 1536  ;;  %s3451_s30 = scalar_lea.hbm %s4609_s4, 3072 }
 0x2b7   : > { %p3448_p4 = scmp.ne.s32.totalorder %s4514_s11, %s3447_s27  ;;  %p3452_p9 = scmp.lt.s32.totalorder %s4514_s11, %s4609_s4 }
 0x2b8   : > { %p3453_p10 = scmp.lt.s32.totalorder %s3451_s30, %s3447_s27 }
 0x2b9   : > { %p3449_p7 = pnand %p3448_p4, %p3601_p5 }
 0x2ba   : > { %p3454_p11 = por %p3453_p10, %p3452_p9 }
 0x2bb   : > { %p3450_p8 = pneg %p3449_p7 }
 0x2bd   : > { %p3455_p12 = pnand %p3454_p11, %p3450_p8 }
 0x2bf   : > { %3458 = shalt.err (!%p3455_p12)
}
 0x2c0   : > { %s3535_s10 = smov 384   ;;  %s3536_s13 = smov 24   ;;  %2630 = vst.msk [vmem:[%s4469_s6 + $0x40] sm:$0xff] %vm2623_vm4, %v2617_v23  ;;  %v2620_v28 = vmul.f32 %v3423_v15, %v3421_v33  ;;  %v3425_v31 = vpop.eup %3424 }
 0x2c1   : > { %3083 = dma.vmem_to_hbm [thread:$0]  (%p3601_p5), %s4516_s8, 1536, %s4514_s11, %s2652_s12, %s3535_s10, %s3535_s10, %s3536_s13   ;;  %v3427_v57 = vpop.eup %3426 }
 0x2c2   : > { %2633 = vst.msk [vmem:[%s4469_s6 + $0x58] sm:$0xff] %vm2623_vm4, %v2620_v28  ;;  %v2611_v20 = vmul.f32 %v3427_v57, %v3425_v31  ;;  %s2665_s14 = sshll.u32 %s4469_s6, 4  ;;  %v3429_v0 = vpop.eup %3428  ;;  %s4558_s8 = scalar_lea.hbm %s4608_s3, %s3080_s7  ;;  %s4560_s14 = int_to_ptr.vmem [resolvable:$true] %s2665_s14 }
 0x2c3   : > { %v3431_v32 = vpop.eup %3430  ;;  %s2647_s11 = scalar_lea.sflag [#allocation4], %s4403_s29  ;;  %s3459_s12 = scalar_lea.vmem %s4560_s14, 1536 }
 0x2c4   : > { %2624 = vst.msk [vmem:[%s4469_s6 + $0x10] sm:$0xff] %vm2623_vm4, %v2611_v20  ;;  %v2614_v14 = vmul.f32 %v3431_v32, %v3429_v0  ;;  %p3460_p13 = scmp.ne.s32.totalorder %s4560_s14, %s3459_s12  ;;  %s3537_s27 = smov [#allocation3]  }
 0x2c5   : > { %s3463_s19 = sshll.u32 %s3537_s27, 4  ;;  %s3464_s19 = int_to_ptr.vmem [resolvable:$false] %s3463_s19 }
 0x2c6   : > { %2627 = vst.msk [vmem:[%s4469_s6 + $0x28] sm:$0xff] %vm2623_vm4, %v2614_v14  ;;  %p3461_p0 = pnand %p3460_p13, %p3601_p5  ;;  %s3465_s23 = scalar_lea.vmem %s3464_s19, 3072 }
 0x2c7   : > { %p3466_p2 = scmp.lt.s32.totalorder %s4560_s14, %s3464_s19  ;;  %p3467_p3 = scmp.lt.s32.totalorder %s3465_s23, %s3459_s12 }
 0x2c8   : > { %p3462_p1 = pneg %p3461_p0 }
 0x2c9   : > { %p3468_p4 = por %p3467_p3, %p3466_p2 }
 0x2cb   : > { %p3469_p7 = pnand %p3468_p4, %p3462_p1 }
 0x2cd   : > { %3472 = shalt.err (!%p3469_p7)
}
 0x2ce   : > { %s3473_s6 = scalar_lea.hbm %s4558_s8, 1536  ;;  %s3477_s28 = scalar_lea.hbm %s4608_s3, 3072 }
 0x2cf   : > { %p3474_p8 = scmp.ne.s32.totalorder %s4558_s8, %s3473_s6  ;;  %p3478_p11 = scmp.lt.s32.totalorder %s4558_s8, %s4608_s3 }
 0x2d0   : > { %p3479_p12 = scmp.lt.s32.totalorder %s3477_s28, %s3473_s6 }
 0x2d1   : > { %p3475_p9 = pnand %p3474_p8, %p3601_p5 }
 0x2d2   : > { %p3480_p13 = por %p3479_p12, %p3478_p11 }
 0x2d3   : > { %p3476_p10 = pneg %p3475_p9 }
 0x2d5   : > { %p3481_p0 = pnand %p3480_p13, %p3476_p10 }
 0x2d7   : > { %3484 = shalt.err (!%p3481_p0)
}
 0x2d8   : > { %3082 = dma.vmem_to_hbm [thread:$0]  (%p3601_p5), %s4560_s14, 1536, %s4558_s8, %s2647_s11, %s3535_s10, %s3535_s10, %s3536_s13  }
 0x2d9 PF: > { %p3093_p1 = scmp.ge.s32.totalorder %s3523_s18, 2  ;;  %s2696_s9 = sand.u32 1, %s3511_s15  }
 0x2da   : > { %s2697_s20 = scalar_lea.sflag [#allocation4], %s2696_s9 }
 0x2db   : > { %p3087_p2 = pnand %p3093_p1, %p3605_p6 }
 0x2dd   : > { %p3088_p3 = pneg %p3087_p2 }
 0x2df   : > { %3502 = dma.done.wait (%p3088_p3), %s2697_s20, 1536  }
 0x2e0   : > { %3504 = vsyncadd (%p3088_p3), %s2697_s20, 4294965760  ;;  %s2706_s22 = scalar_lea.sflag [#allocation6], %s2696_s9 }
 0x2e1   : > { %3506 = dma.done.wait (%p3088_p3), %s2706_s22, 1536  }
 0x2e2   : > { %3508 = vsyncadd (%p3088_p3), %s2706_s22, 4294965760  ;;  %p18_p5 = scmp.ge.s32.totalorder %s3588_s21, 4   ;;  %s4612_s15 = smov %s3515_s16 }
 0x2e3   : > { %s4613_s16 = smov %s3519_s17  ;;  %s4614_s17 = smov %s3599_s24 }
 0x2e4   : > { %s4615_s18 = smov %s3588_s21  ;;  %20 = sbr.rel (!%p18_p5) target bundleno = 5 (0x5), region = 87 }
 0x2e9   :  { %2711 = vsyncpa [#allocation4], 1 }
 0x2ea   :  { %2713 = vsyncpa [#allocation4 + $0x1], 1 }
 0x2eb   :  { %2714 = vsyncpa [#allocation6], 1 }
 0x2ec   :  { %2716 = vsyncpa [#allocation6 + $0x1], 1 }

</bundles_post_ra>
